<compile_context>
chip_gen: v7x
topology: tpu7x:2x2x1
jax: 0.10.0
libtpu: 0.0.40
codegen_flags: <defaults>
</compile_context>

<pallas_src>
import functools

import numpy as np

import jax
import jax.numpy as jnp
from jax.experimental import pallas as pl
from jax.experimental.pallas import tpu as pltpu


MATMUL_DTYPE = jnp.bfloat16   # MXU-native operand dtype; accumulation stays f32.


# ---------------------------------------------------------------------------
# In-kernel exact GELU (erf via Abramowitz-Stegun 7.1.26, |err| < 1.5e-7).
# Uses only mul/add/abs/where/div/exp, so it lowers cleanly on Mosaic.
# ---------------------------------------------------------------------------
def _gelu_exact(x):
    inv_sqrt2 = jnp.float32(0.7071067811865476)
    z = x * inv_sqrt2
    sgn = jnp.where(z < 0.0, jnp.float32(-1.0), jnp.float32(1.0))
    az = jnp.abs(z)
    t = 1.0 / (1.0 + jnp.float32(0.3275911) * az)
    poly = ((((jnp.float32(1.061405429) * t + jnp.float32(-1.453152027)) * t
              + jnp.float32(1.421413741)) * t + jnp.float32(-0.284496736)) * t
            + jnp.float32(0.254829592)) * t
    erf = sgn * (1.0 - poly * jnp.exp(-az * az))
    return 0.5 * x * (1.0 + erf)


# ---------------------------------------------------------------------------
# Fused encoder kernel: one image per grid step, whole network in VMEM.
#   refs = [Q_1, RW_1, b_1, ..., Q_5, RW_5, b_5, G_lin, b_lin, out]
# ---------------------------------------------------------------------------
def _encoder_kernel(x_ref, *refs):
    o_ref = refs[-1]
    params = refs[:-1]
    num_conv = (len(params) - 2) // 3

    # Per-image activation matrix X: (W, C*H) -- lane-dense (C*H = 96..128).
    x = x_ref[0].astype(jnp.float32)

    for layer in range(num_conv):
        q_ref = params[3 * layer]        # (3, Wo, W)            0/1 selection (bf16)
        rw_ref = params[3 * layer + 1]   # (3, Cin*H, Cout*Ho)   folded weights (bf16)
        b_ref = params[3 * layer + 2]    # (1, Cout*Ho)          bias row (f32)
        wo = q_ref.shape[1]
        co_ho = rw_ref.shape[2]

        xb = x.astype(MATMUL_DTYPE)
        acc = jnp.zeros((wo, co_ho), jnp.float32)
        for kw in range(3):
            # Horizontal shift/stride/zero-pad (exact 0/1 row selection) ...
            t = jnp.dot(q_ref[kw], xb, preferred_element_type=jnp.float32)
            # ... then vertical shift/stride/zero-pad + channel mixing (conv weights).
            acc = acc + jnp.dot(t.astype(MATMUL_DTYPE), rw_ref[kw],
                                preferred_element_type=jnp.float32)
        x = _gelu_exact(acc + b_ref[...])

    # Flatten (NCHW order, folded into G on the host) + Linear.
    g_ref = params[-2]                   # (W5, C5*H5, latent)  (bf16)
    bl_ref = params[-1]                  # (1, latent)          (f32)
    w5 = g_ref.shape[0]
    xb = x.astype(MATMUL_DTYPE)          # (W5, C5*H5)
    z = bl_ref[...]                      # (1, latent) f32
    for w in range(w5):
        pw = jnp.dot(xb, g_ref[w], preferred_element_type=jnp.float32)  # (W5, latent)
        z = z + pw[w:w + 1, :]
    o_ref[0] = z.astype(o_ref.dtype)


def _const_index_map(ndim, i):
    return (0,) * ndim


def encoder_forward(params, x_nchw):
    """Fused forward pass.  `params` comes from build_fused_params(); x is NCHW."""
    convs = params["conv"]               # list of (Q, RW, bias_row)
    g_lin, b_lin = params["linear"]

    batch, chan, height, width = x_nchw.shape
    # Per-image layout X[b, w, c*H + h] = x[b, c, h, w]  (one tiny input transform).
    x_in = jnp.transpose(x_nchw, (0, 3, 1, 2)).reshape(batch, width, chan * height)
    x_in = x_in.astype(jnp.float32)

    flat = []
    for (q, rw, b) in convs:
        flat.extend((q, rw, b))
    flat.extend((g_lin, b_lin))

    latent = b_lin.shape[-1]

    in_specs = [pl.BlockSpec((1, width, chan * height), lambda i: (i, 0, 0))]
    for arr in flat:
        in_specs.append(
            pl.BlockSpec(arr.shape, functools.partial(_const_index_map, arr.ndim)))

    out = pl.pallas_call(
        _encoder_kernel,
        out_shape=jax.ShapeDtypeStruct((batch, 1, latent), jnp.float32),
        grid=(batch,),
        in_specs=in_specs,
        out_specs=pl.BlockSpec((1, 1, latent), lambda i: (i, 0, 0)),
        compiler_params=pltpu.CompilerParams(
            dimension_semantics=("parallel",)),
    )(x_in, *flat)
    return out.reshape(batch, latent)


# ---------------------------------------------------------------------------
# Parameter init (deterministic, synthetic) mirroring the PyTorch module.
# Conv weights are HWIO (3, 3, C_in, C_out); linear weight is (features, latent)
# with rows in NCHW-flatten order (like nn.Flatten on NCHW).
# ---------------------------------------------------------------------------
def init_encoder_params(key, num_input_channels, base_channel_size, latent_dim):
    c_hid = base_channel_size
    cfg = [
        (num_input_channels, c_hid, 2),
        (c_hid, c_hid, 1),
        (c_hid, 2 * c_hid, 2),
        (2 * c_hid, 2 * c_hid, 1),
        (2 * c_hid, 2 * c_hid, 2),
    ]
    convs = []
    for i, (ci, co, _s) in enumerate(cfg):
        w = jax.random.normal(jax.random.fold_in(key, 2 * i), (3, 3, ci, co),
                              jnp.float32) * 0.05
        b = jax.random.normal(jax.random.fold_in(key, 2 * i + 1), (co,),
                              jnp.float32) * 0.05
        convs.append((w, b))
    feat = 2 * 16 * c_hid                 # == 2*c_hid * 4 * 4  (requires 32x32 input)
    wl = jax.random.normal(jax.random.fold_in(key, 100), (feat, latent_dim),
                           jnp.float32) * 0.05
    bl = jax.random.normal(jax.random.fold_in(key, 101), (latent_dim,),
                           jnp.float32) * 0.05
    return {"convs": convs, "strides": [s for _, _, s in cfg], "linear": (wl, bl)}


def build_fused_params(raw, in_height, in_width, matmul_dtype=MATMUL_DTYPE):
    """One-time host-side refactoring of conv/linear weights into the
    (Q, RW, bias-row) matrices consumed by the fused kernel (see module header)."""
    conv_mats = []
    H, W = in_height, in_width
    C = None
    for (w, b), stride in zip(raw["convs"], raw["strides"]):
        w_np = np.asarray(w, np.float32)           # (3, 3, Cin, Cout)
        b_np = np.asarray(b, np.float32)
        cin, cout = w_np.shape[2], w_np.shape[3]
        Ho = (H + 2 - 3) // stride + 1
        Wo = (W + 2 - 3) // stride + 1

        # 0/1 selection matrices implementing shift + stride + zero padding.
        Qs = np.zeros((3, Wo, W), np.float32)      # horizontal (kw)
        Rs = np.zeros((3, H, Ho), np.float32)      # vertical   (kh)
        for k in range(3):
            for wo in range(Wo):
                col = stride * wo + k - 1
                if 0 <= col < W:
                    Qs[k, wo, col] = 1.0
            for ho in range(Ho):
                row = stride * ho + k - 1
                if 0 <= row < H:
                    Rs[k, row, ho] = 1.0

        # RW_kw[ci*H + h, co*Ho + ho] = sum_kh w[kh, kw, ci, co] * Rs[kh][h, ho]
        RWs = np.zeros((3, cin * H, cout * Ho), np.float32)
        for kw in range(3):
            acc = np.zeros((cin * H, cout * Ho), np.float32)
            for kh in range(3):
                acc += np.kron(w_np[kh, kw], Rs[kh])
            RWs[kw] = acc

        b_row = np.repeat(b_np, Ho)[None, :]       # index co*Ho + ho -> b[co]

        conv_mats.append((jnp.asarray(Qs, matmul_dtype),
                          jnp.asarray(RWs, matmul_dtype),
                          jnp.asarray(b_row, jnp.float32)))
        H, W, C = Ho, Wo, cout

    wl_np = np.asarray(raw["linear"][0], np.float32)   # (C*H*W, latent)
    bl_np = np.asarray(raw["linear"][1], np.float32)
    feat, latent = wl_np.shape
    if feat != C * H * W:
        raise ValueError(
            f"Linear expects {feat} input features but the conv stack produces "
            f"{C * H * W} (= {C}x{H}x{W}); the reference module requires 32x32 inputs.")
    # G[w, c*H + h, l] = wl[c*H*W + h*W + w, l]  -- NCHW flatten folded into the weight.
    G = wl_np.reshape(C, H, W, latent).transpose(2, 0, 1, 3).reshape(W, C * H, latent)
    return {"conv": conv_mats,
            "linear": (jnp.asarray(G, matmul_dtype),
                       jnp.asarray(bl_np[None, :], jnp.float32))}


# ---------------------------------------------------------------------------
# Plain-JAX (XLA) reference with identical semantics, for validation only.
# ---------------------------------------------------------------------------
def encoder_reference(raw, x_nchw):
    h = x_nchw.astype(jnp.float32)
    for (w, b), s in zip(raw["convs"], raw["strides"]):
        h = jax.lax.conv_general_dilated(
            h, w, window_strides=(s, s), padding=((1, 1), (1, 1)),
            dimension_numbers=("NCHW", "HWIO", "NCHW"))
        h = h + b[None, :, None, None]
        h = jax.nn.gelu(h, approximate=False)
    flat = h.reshape(h.shape[0], -1)          # NCHW flatten, like nn.Flatten
    wl, bl = raw["linear"]
    return flat @ wl + bl[None, :]


if __name__ == "__main__":
    key = jax.random.PRNGKey(0)

    num_input_channels = 3
    base_channel_size = 8       # c_hid
    latent_dim = 32
    batch = 2
    # 32x32 spatial is implied by Linear(2*16*c_hid, .): 32 -> 16 -> 16 -> 8 -> 8 -> 4.
    x = jax.random.normal(jax.random.fold_in(key, 999),
                          (batch, num_input_channels, 32, 32), jnp.float32)

    raw = init_encoder_params(key, num_input_channels, base_channel_size, latent_dim)
    params = build_fused_params(raw, 32, 32)

    fwd = jax.jit(encoder_forward)
    z = fwd(params, x)
    jax.block_until_ready(z)

    assert z.shape == (batch, latent_dim), z.shape
    assert bool(jnp.all(jnp.isfinite(z)))

    # Validate against the plain-JAX reference (kernel uses bf16 matmul operands
    # with f32 accumulation, hence the loose-but-meaningful tolerance).
    z_ref = encoder_reference(raw, x)
    np.testing.assert_allclose(np.asarray(z), np.asarray(z_ref), rtol=0.1, atol=2e-3)

    print("KERNEL_OK")
</pallas_src>

<mosaic_0001>
module attributes {stable_mosaic.version = 11 : i64} {
  func.func @_encoder_kernel(%arg0: i32, %arg1: memref<1x32x96xf32, #tpu.memory_space<vmem>>, %arg2: memref<3x16x32xbf16, #tpu.memory_space<vmem>>, %arg3: memref<3x96x128xbf16, #tpu.memory_space<vmem>>, %arg4: memref<1x128xf32, #tpu.memory_space<vmem>>, %arg5: memref<3x16x16xbf16, #tpu.memory_space<vmem>>, %arg6: memref<3x128x128xbf16, #tpu.memory_space<vmem>>, %arg7: memref<1x128xf32, #tpu.memory_space<vmem>>, %arg8: memref<3x8x16xbf16, #tpu.memory_space<vmem>>, %arg9: memref<3x128x128xbf16, #tpu.memory_space<vmem>>, %arg10: memref<1x128xf32, #tpu.memory_space<vmem>>, %arg11: memref<3x8x8xbf16, #tpu.memory_space<vmem>>, %arg12: memref<3x128x128xbf16, #tpu.memory_space<vmem>>, %arg13: memref<1x128xf32, #tpu.memory_space<vmem>>, %arg14: memref<3x4x8xbf16, #tpu.memory_space<vmem>>, %arg15: memref<3x128x64xbf16, #tpu.memory_space<vmem>>, %arg16: memref<1x64xf32, #tpu.memory_space<vmem>>, %arg17: memref<4x64x32xbf16, #tpu.memory_space<vmem>>, %arg18: memref<1x32xf32, #tpu.memory_space<vmem>>, %arg19: memref<1x1x32xf32, #tpu.memory_space<vmem>>) attributes {dimension_semantics = [#tpu.dimension_semantics<parallel>], iteration_bounds = array<i64: 2>, scalar_prefetch = 0 : i64, scratch_operands = 0 : i64, tpu.core_type = #tpu.core_type<tc>, window_params = [{transform_indices = @transform_0, window_bounds = array<i64: 1, 32, 96>}, {pipeline_mode = #tpu.pipeline_mode<synchronous>, transform_indices = @transform_1, window_bounds = array<i64: 3, 16, 32>}, {pipeline_mode = #tpu.pipeline_mode<synchronous>, transform_indices = @transform_2, window_bounds = array<i64: 3, 96, 128>}, {pipeline_mode = #tpu.pipeline_mode<synchronous>, transform_indices = @transform_3, window_bounds = array<i64: 1, 128>}, {pipeline_mode = #tpu.pipeline_mode<synchronous>, transform_indices = @transform_4, window_bounds = array<i64: 3, 16, 16>}, {pipeline_mode = #tpu.pipeline_mode<synchronous>, transform_indices = @transform_5, window_bounds = array<i64: 3, 128, 128>}, {pipeline_mode = #tpu.pipeline_mode<synchronous>, transform_indices = @transform_6, window_bounds = array<i64: 1, 128>}, {pipeline_mode = #tpu.pipeline_mode<synchronous>, transform_indices = @transform_7, window_bounds = array<i64: 3, 8, 16>}, {pipeline_mode = #tpu.pipeline_mode<synchronous>, transform_indices = @transform_8, window_bounds = array<i64: 3, 128, 128>}, {pipeline_mode = #tpu.pipeline_mode<synchronous>, transform_indices = @transform_9, window_bounds = array<i64: 1, 128>}, {pipeline_mode = #tpu.pipeline_mode<synchronous>, transform_indices = @transform_10, window_bounds = array<i64: 3, 8, 8>}, {pipeline_mode = #tpu.pipeline_mode<synchronous>, transform_indices = @transform_11, window_bounds = array<i64: 3, 128, 128>}, {pipeline_mode = #tpu.pipeline_mode<synchronous>, transform_indices = @transform_12, window_bounds = array<i64: 1, 128>}, {pipeline_mode = #tpu.pipeline_mode<synchronous>, transform_indices = @transform_13, window_bounds = array<i64: 3, 4, 8>}, {pipeline_mode = #tpu.pipeline_mode<synchronous>, transform_indices = @transform_14, window_bounds = array<i64: 3, 128, 64>}, {pipeline_mode = #tpu.pipeline_mode<synchronous>, transform_indices = @transform_15, window_bounds = array<i64: 1, 64>}, {pipeline_mode = #tpu.pipeline_mode<synchronous>, transform_indices = @transform_16, window_bounds = array<i64: 4, 64, 32>}, {pipeline_mode = #tpu.pipeline_mode<synchronous>, transform_indices = @transform_17, window_bounds = array<i64: 1, 32>}, {transform_indices = @transform_18, window_bounds = array<i64: 1, 1, 32>}]} {
    %c0 = arith.constant 0 : index
    %c0_0 = arith.constant 0 : index
    %c0_1 = arith.constant 0 : index
    %0 = vector.load %arg1[%c0, %c0_0, %c0_1] : memref<1x32x96xf32, #tpu.memory_space<vmem>>, vector<1x32x96xf32>
    %1 = vector.shape_cast %0 : vector<1x32x96xf32> to vector<32x96xf32>
    %2 = arith.truncf %1 : vector<32x96xf32> to vector<32x96xbf16>
    %cst = arith.constant 0.000000e+00 : f32
    %3 = vector.broadcast %cst : f32 to vector<16x128xf32>
    %c0_2 = arith.constant 0 : index
    %c0_3 = arith.constant 0 : index
    %c0_4 = arith.constant 0 : index
    %4 = vector.load %arg2[%c0_2, %c0_3, %c0_4] : memref<3x16x32xbf16, #tpu.memory_space<vmem>>, vector<1x16x32xbf16>
    %5 = vector.shape_cast %4 : vector<1x16x32xbf16> to vector<16x32xbf16>
    %cst_5 = arith.constant dense<0.000000e+00> : vector<16x96xf32>
    %6 = tpu.matmul %5, %2, %cst_5 {dimension_numbers = #tpu.dot_dimension_numbers<[1], [0], [0], [1], [0, 0, 1, 1], [], []>} : vector<16x32xbf16>, vector<32x96xbf16>, vector<16x96xf32> -> vector<16x96xf32>
    %7 = arith.truncf %6 : vector<16x96xf32> to vector<16x96xbf16>
    %c0_6 = arith.constant 0 : index
    %c0_7 = arith.constant 0 : index
    %c0_8 = arith.constant 0 : index
    %8 = vector.load %arg3[%c0_6, %c0_7, %c0_8] : memref<3x96x128xbf16, #tpu.memory_space<vmem>>, vector<1x96x128xbf16>
    %9 = vector.shape_cast %8 : vector<1x96x128xbf16> to vector<96x128xbf16>
    %cst_9 = arith.constant dense<0.000000e+00> : vector<16x128xf32>
    %10 = tpu.matmul %7, %9, %cst_9 {dimension_numbers = #tpu.dot_dimension_numbers<[1], [0], [0], [1], [0, 0, 1, 1], [], []>} : vector<16x96xbf16>, vector<96x128xbf16>, vector<16x128xf32> -> vector<16x128xf32>
    %11 = arith.addf %3, %10 : vector<16x128xf32>
    %c1 = arith.constant 1 : index
    %c0_10 = arith.constant 0 : index
    %c0_11 = arith.constant 0 : index
    %12 = vector.load %arg2[%c1, %c0_10, %c0_11] : memref<3x16x32xbf16, #tpu.memory_space<vmem>>, vector<1x16x32xbf16>
    %13 = vector.shape_cast %12 : vector<1x16x32xbf16> to vector<16x32xbf16>
    %cst_12 = arith.constant dense<0.000000e+00> : vector<16x96xf32>
    %14 = tpu.matmul %13, %2, %cst_12 {dimension_numbers = #tpu.dot_dimension_numbers<[1], [0], [0], [1], [0, 0, 1, 1], [], []>} : vector<16x32xbf16>, vector<32x96xbf16>, vector<16x96xf32> -> vector<16x96xf32>
    %15 = arith.truncf %14 : vector<16x96xf32> to vector<16x96xbf16>
    %c1_13 = arith.constant 1 : index
    %c0_14 = arith.constant 0 : index
    %c0_15 = arith.constant 0 : index
    %16 = vector.load %arg3[%c1_13, %c0_14, %c0_15] : memref<3x96x128xbf16, #tpu.memory_space<vmem>>, vector<1x96x128xbf16>
    %17 = vector.shape_cast %16 : vector<1x96x128xbf16> to vector<96x128xbf16>
    %cst_16 = arith.constant dense<0.000000e+00> : vector<16x128xf32>
    %18 = tpu.matmul %15, %17, %cst_16 {dimension_numbers = #tpu.dot_dimension_numbers<[1], [0], [0], [1], [0, 0, 1, 1], [], []>} : vector<16x96xbf16>, vector<96x128xbf16>, vector<16x128xf32> -> vector<16x128xf32>
    %19 = arith.addf %11, %18 : vector<16x128xf32>
    %c2 = arith.constant 2 : index
    %c0_17 = arith.constant 0 : index
    %c0_18 = arith.constant 0 : index
    %20 = vector.load %arg2[%c2, %c0_17, %c0_18] : memref<3x16x32xbf16, #tpu.memory_space<vmem>>, vector<1x16x32xbf16>
    %21 = vector.shape_cast %20 : vector<1x16x32xbf16> to vector<16x32xbf16>
    %cst_19 = arith.constant dense<0.000000e+00> : vector<16x96xf32>
    %22 = tpu.matmul %21, %2, %cst_19 {dimension_numbers = #tpu.dot_dimension_numbers<[1], [0], [0], [1], [0, 0, 1, 1], [], []>} : vector<16x32xbf16>, vector<32x96xbf16>, vector<16x96xf32> -> vector<16x96xf32>
    %23 = arith.truncf %22 : vector<16x96xf32> to vector<16x96xbf16>
    %c2_20 = arith.constant 2 : index
    %c0_21 = arith.constant 0 : index
    %c0_22 = arith.constant 0 : index
    %24 = vector.load %arg3[%c2_20, %c0_21, %c0_22] : memref<3x96x128xbf16, #tpu.memory_space<vmem>>, vector<1x96x128xbf16>
    %25 = vector.shape_cast %24 : vector<1x96x128xbf16> to vector<96x128xbf16>
    %cst_23 = arith.constant dense<0.000000e+00> : vector<16x128xf32>
    %26 = tpu.matmul %23, %25, %cst_23 {dimension_numbers = #tpu.dot_dimension_numbers<[1], [0], [0], [1], [0, 0, 1, 1], [], []>} : vector<16x96xbf16>, vector<96x128xbf16>, vector<16x128xf32> -> vector<16x128xf32>
    %27 = arith.addf %19, %26 : vector<16x128xf32>
    %c0_24 = arith.constant 0 : index
    %c0_25 = arith.constant 0 : index
    %28 = vector.load %arg4[%c0_24, %c0_25] : memref<1x128xf32, #tpu.memory_space<vmem>>, vector<1x128xf32>
    %29 = vector.broadcast %28 : vector<1x128xf32> to vector<16x128xf32>
    %30 = arith.addf %27, %29 : vector<16x128xf32>
    %cst_26 = arith.constant 0.707106769 : f32
    %31 = vector.broadcast %cst_26 : f32 to vector<16x128xf32>
    %32 = arith.mulf %30, %31 : vector<16x128xf32>
    %cst_27 = arith.constant 0.000000e+00 : f32
    %33 = vector.broadcast %cst_27 : f32 to vector<16x128xf32>
    %34 = arith.cmpf olt, %32, %33 : vector<16x128xf32>
    %cst_28 = arith.constant -1.000000e+00 : f32
    %cst_29 = arith.constant 1.000000e+00 : f32
    %35 = vector.broadcast %cst_28 : f32 to vector<16x128xf32>
    %36 = vector.broadcast %cst_29 : f32 to vector<16x128xf32>
    %37 = arith.select %34, %35, %36 : vector<16x128xi1>, vector<16x128xf32>
    %38 = math.absf %32 : vector<16x128xf32>
    %cst_30 = arith.constant 0.327591091 : f32
    %39 = vector.broadcast %cst_30 : f32 to vector<16x128xf32>
    %40 = arith.mulf %39, %38 : vector<16x128xf32>
    %cst_31 = arith.constant 1.000000e+00 : f32
    %41 = vector.broadcast %cst_31 : f32 to vector<16x128xf32>
    %42 = arith.addf %41, %40 : vector<16x128xf32>
    %cst_32 = arith.constant 1.000000e+00 : f32
    %43 = vector.broadcast %cst_32 : f32 to vector<16x128xf32>
    %44 = arith.divf %43, %42 : vector<16x128xf32>
    %cst_33 = arith.constant 1.06140542 : f32
    %45 = vector.broadcast %cst_33 : f32 to vector<16x128xf32>
    %46 = arith.mulf %45, %44 : vector<16x128xf32>
    %cst_34 = arith.constant -1.45315206 : f32
    %47 = vector.broadcast %cst_34 : f32 to vector<16x128xf32>
    %48 = arith.addf %46, %47 : vector<16x128xf32>
    %49 = arith.mulf %48, %44 : vector<16x128xf32>
    %cst_35 = arith.constant 1.42141378 : f32
    %50 = vector.broadcast %cst_35 : f32 to vector<16x128xf32>
    %51 = arith.addf %49, %50 : vector<16x128xf32>
    %52 = arith.mulf %51, %44 : vector<16x128xf32>
    %cst_36 = arith.constant -0.284496725 : f32
    %53 = vector.broadcast %cst_36 : f32 to vector<16x128xf32>
    %54 = arith.addf %52, %53 : vector<16x128xf32>
    %55 = arith.mulf %54, %44 : vector<16x128xf32>
    %cst_37 = arith.constant 0.254829586 : f32
    %56 = vector.broadcast %cst_37 : f32 to vector<16x128xf32>
    %57 = arith.addf %55, %56 : vector<16x128xf32>
    %58 = arith.mulf %57, %44 : vector<16x128xf32>
    %cst_38 = arith.constant 0.000000e+00 : f32
    %59 = vector.broadcast %cst_38 : f32 to vector<16x128xf32>
    %60 = arith.subf %59, %38 : vector<16x128xf32>
    %61 = arith.mulf %60, %38 : vector<16x128xf32>
    %62 = math.exp %61 : vector<16x128xf32>
    %63 = arith.mulf %58, %62 : vector<16x128xf32>
    %cst_39 = arith.constant 1.000000e+00 : f32
    %64 = vector.broadcast %cst_39 : f32 to vector<16x128xf32>
    %65 = arith.subf %64, %63 : vector<16x128xf32>
    %66 = arith.mulf %37, %65 : vector<16x128xf32>
    %cst_40 = arith.constant 5.000000e-01 : f32
    %67 = vector.broadcast %cst_40 : f32 to vector<16x128xf32>
    %68 = arith.mulf %67, %30 : vector<16x128xf32>
    %cst_41 = arith.constant 1.000000e+00 : f32
    %69 = vector.broadcast %cst_41 : f32 to vector<16x128xf32>
    %70 = arith.addf %69, %66 : vector<16x128xf32>
    %71 = arith.mulf %68, %70 : vector<16x128xf32>
    %72 = arith.truncf %71 : vector<16x128xf32> to vector<16x128xbf16>
    %cst_42 = arith.constant 0.000000e+00 : f32
    %73 = vector.broadcast %cst_42 : f32 to vector<16x128xf32>
    %c0_43 = arith.constant 0 : index
    %c0_44 = arith.constant 0 : index
    %c0_45 = arith.constant 0 : index
    %74 = vector.load %arg5[%c0_43, %c0_44, %c0_45] : memref<3x16x16xbf16, #tpu.memory_space<vmem>>, vector<1x16x16xbf16>
    %75 = vector.shape_cast %74 : vector<1x16x16xbf16> to vector<16x16xbf16>
    %cst_46 = arith.constant dense<0.000000e+00> : vector<16x128xf32>
    %76 = tpu.matmul %75, %72, %cst_46 {dimension_numbers = #tpu.dot_dimension_numbers<[1], [0], [0], [1], [0, 0, 1, 1], [], []>} : vector<16x16xbf16>, vector<16x128xbf16>, vector<16x128xf32> -> vector<16x128xf32>
    %77 = arith.truncf %76 : vector<16x128xf32> to vector<16x128xbf16>
    %c0_47 = arith.constant 0 : index
    %c0_48 = arith.constant 0 : index
    %c0_49 = arith.constant 0 : index
    %78 = vector.load %arg6[%c0_47, %c0_48, %c0_49] : memref<3x128x128xbf16, #tpu.memory_space<vmem>>, vector<1x128x128xbf16>
    %79 = vector.shape_cast %78 : vector<1x128x128xbf16> to vector<128x128xbf16>
    %cst_50 = arith.constant dense<0.000000e+00> : vector<16x128xf32>
    %80 = tpu.matmul %77, %79, %cst_50 {dimension_numbers = #tpu.dot_dimension_numbers<[1], [0], [0], [1], [0, 0, 1, 1], [], []>} : vector<16x128xbf16>, vector<128x128xbf16>, vector<16x128xf32> -> vector<16x128xf32>
    %81 = arith.addf %73, %80 : vector<16x128xf32>
    %c1_51 = arith.constant 1 : index
    %c0_52 = arith.constant 0 : index
    %c0_53 = arith.constant 0 : index
    %82 = vector.load %arg5[%c1_51, %c0_52, %c0_53] : memref<3x16x16xbf16, #tpu.memory_space<vmem>>, vector<1x16x16xbf16>
    %83 = vector.shape_cast %82 : vector<1x16x16xbf16> to vector<16x16xbf16>
    %cst_54 = arith.constant dense<0.000000e+00> : vector<16x128xf32>
    %84 = tpu.matmul %83, %72, %cst_54 {dimension_numbers = #tpu.dot_dimension_numbers<[1], [0], [0], [1], [0, 0, 1, 1], [], []>} : vector<16x16xbf16>, vector<16x128xbf16>, vector<16x128xf32> -> vector<16x128xf32>
    %85 = arith.truncf %84 : vector<16x128xf32> to vector<16x128xbf16>
    %c1_55 = arith.constant 1 : index
    %c0_56 = arith.constant 0 : index
    %c0_57 = arith.constant 0 : index
    %86 = vector.load %arg6[%c1_55, %c0_56, %c0_57] : memref<3x128x128xbf16, #tpu.memory_space<vmem>>, vector<1x128x128xbf16>
    %87 = vector.shape_cast %86 : vector<1x128x128xbf16> to vector<128x128xbf16>
    %cst_58 = arith.constant dense<0.000000e+00> : vector<16x128xf32>
    %88 = tpu.matmul %85, %87, %cst_58 {dimension_numbers = #tpu.dot_dimension_numbers<[1], [0], [0], [1], [0, 0, 1, 1], [], []>} : vector<16x128xbf16>, vector<128x128xbf16>, vector<16x128xf32> -> vector<16x128xf32>
    %89 = arith.addf %81, %88 : vector<16x128xf32>
    %c2_59 = arith.constant 2 : index
    %c0_60 = arith.constant 0 : index
    %c0_61 = arith.constant 0 : index
    %90 = vector.load %arg5[%c2_59, %c0_60, %c0_61] : memref<3x16x16xbf16, #tpu.memory_space<vmem>>, vector<1x16x16xbf16>
    %91 = vector.shape_cast %90 : vector<1x16x16xbf16> to vector<16x16xbf16>
    %cst_62 = arith.constant dense<0.000000e+00> : vector<16x128xf32>
    %92 = tpu.matmul %91, %72, %cst_62 {dimension_numbers = #tpu.dot_dimension_numbers<[1], [0], [0], [1], [0, 0, 1, 1], [], []>} : vector<16x16xbf16>, vector<16x128xbf16>, vector<16x128xf32> -> vector<16x128xf32>
    %93 = arith.truncf %92 : vector<16x128xf32> to vector<16x128xbf16>
    %c2_63 = arith.constant 2 : index
    %c0_64 = arith.constant 0 : index
    %c0_65 = arith.constant 0 : index
    %94 = vector.load %arg6[%c2_63, %c0_64, %c0_65] : memref<3x128x128xbf16, #tpu.memory_space<vmem>>, vector<1x128x128xbf16>
    %95 = vector.shape_cast %94 : vector<1x128x128xbf16> to vector<128x128xbf16>
    %cst_66 = arith.constant dense<0.000000e+00> : vector<16x128xf32>
    %96 = tpu.matmul %93, %95, %cst_66 {dimension_numbers = #tpu.dot_dimension_numbers<[1], [0], [0], [1], [0, 0, 1, 1], [], []>} : vector<16x128xbf16>, vector<128x128xbf16>, vector<16x128xf32> -> vector<16x128xf32>
    %97 = arith.addf %89, %96 : vector<16x128xf32>
    %c0_67 = arith.constant 0 : index
    %c0_68 = arith.constant 0 : index
    %98 = vector.load %arg7[%c0_67, %c0_68] : memref<1x128xf32, #tpu.memory_space<vmem>>, vector<1x128xf32>
    %99 = vector.broadcast %98 : vector<1x128xf32> to vector<16x128xf32>
    %100 = arith.addf %97, %99 : vector<16x128xf32>
    %cst_69 = arith.constant 0.707106769 : f32
    %101 = vector.broadcast %cst_69 : f32 to vector<16x128xf32>
    %102 = arith.mulf %100, %101 : vector<16x128xf32>
    %cst_70 = arith.constant 0.000000e+00 : f32
    %103 = vector.broadcast %cst_70 : f32 to vector<16x128xf32>
    %104 = arith.cmpf olt, %102, %103 : vector<16x128xf32>
    %cst_71 = arith.constant -1.000000e+00 : f32
    %cst_72 = arith.constant 1.000000e+00 : f32
    %105 = vector.broadcast %cst_71 : f32 to vector<16x128xf32>
    %106 = vector.broadcast %cst_72 : f32 to vector<16x128xf32>
    %107 = arith.select %104, %105, %106 : vector<16x128xi1>, vector<16x128xf32>
    %108 = math.absf %102 : vector<16x128xf32>
    %cst_73 = arith.constant 0.327591091 : f32
    %109 = vector.broadcast %cst_73 : f32 to vector<16x128xf32>
    %110 = arith.mulf %109, %108 : vector<16x128xf32>
    %cst_74 = arith.constant 1.000000e+00 : f32
    %111 = vector.broadcast %cst_74 : f32 to vector<16x128xf32>
    %112 = arith.addf %111, %110 : vector<16x128xf32>
    %cst_75 = arith.constant 1.000000e+00 : f32
    %113 = vector.broadcast %cst_75 : f32 to vector<16x128xf32>
    %114 = arith.divf %113, %112 : vector<16x128xf32>
    %cst_76 = arith.constant 1.06140542 : f32
    %115 = vector.broadcast %cst_76 : f32 to vector<16x128xf32>
    %116 = arith.mulf %115, %114 : vector<16x128xf32>
    %cst_77 = arith.constant -1.45315206 : f32
    %117 = vector.broadcast %cst_77 : f32 to vector<16x128xf32>
    %118 = arith.addf %116, %117 : vector<16x128xf32>
    %119 = arith.mulf %118, %114 : vector<16x128xf32>
    %cst_78 = arith.constant 1.42141378 : f32
    %120 = vector.broadcast %cst_78 : f32 to vector<16x128xf32>
    %121 = arith.addf %119, %120 : vector<16x128xf32>
    %122 = arith.mulf %121, %114 : vector<16x128xf32>
    %cst_79 = arith.constant -0.284496725 : f32
    %123 = vector.broadcast %cst_79 : f32 to vector<16x128xf32>
    %124 = arith.addf %122, %123 : vector<16x128xf32>
    %125 = arith.mulf %124, %114 : vector<16x128xf32>
    %cst_80 = arith.constant 0.254829586 : f32
    %126 = vector.broadcast %cst_80 : f32 to vector<16x128xf32>
    %127 = arith.addf %125, %126 : vector<16x128xf32>
    %128 = arith.mulf %127, %114 : vector<16x128xf32>
    %cst_81 = arith.constant 0.000000e+00 : f32
    %129 = vector.broadcast %cst_81 : f32 to vector<16x128xf32>
    %130 = arith.subf %129, %108 : vector<16x128xf32>
    %131 = arith.mulf %130, %108 : vector<16x128xf32>
    %132 = math.exp %131 : vector<16x128xf32>
    %133 = arith.mulf %128, %132 : vector<16x128xf32>
    %cst_82 = arith.constant 1.000000e+00 : f32
    %134 = vector.broadcast %cst_82 : f32 to vector<16x128xf32>
    %135 = arith.subf %134, %133 : vector<16x128xf32>
    %136 = arith.mulf %107, %135 : vector<16x128xf32>
    %cst_83 = arith.constant 5.000000e-01 : f32
    %137 = vector.broadcast %cst_83 : f32 to vector<16x128xf32>
    %138 = arith.mulf %137, %100 : vector<16x128xf32>
    %cst_84 = arith.constant 1.000000e+00 : f32
    %139 = vector.broadcast %cst_84 : f32 to vector<16x128xf32>
    %140 = arith.addf %139, %136 : vector<16x128xf32>
    %141 = arith.mulf %138, %140 : vector<16x128xf32>
    %142 = arith.truncf %141 : vector<16x128xf32> to vector<16x128xbf16>
    %cst_85 = arith.constant 0.000000e+00 : f32
    %143 = vector.broadcast %cst_85 : f32 to vector<8x128xf32>
    %c0_86 = arith.constant 0 : index
    %c0_87 = arith.constant 0 : index
    %c0_88 = arith.constant 0 : index
    %144 = vector.load %arg8[%c0_86, %c0_87, %c0_88] : memref<3x8x16xbf16, #tpu.memory_space<vmem>>, vector<1x8x16xbf16>
    %145 = vector.shape_cast %144 : vector<1x8x16xbf16> to vector<8x16xbf16>
    %cst_89 = arith.constant dense<0.000000e+00> : vector<8x128xf32>
    %146 = tpu.matmul %145, %142, %cst_89 {dimension_numbers = #tpu.dot_dimension_numbers<[1], [0], [0], [1], [0, 0, 1, 1], [], []>} : vector<8x16xbf16>, vector<16x128xbf16>, vector<8x128xf32> -> vector<8x128xf32>
    %147 = arith.truncf %146 : vector<8x128xf32> to vector<8x128xbf16>
    %c0_90 = arith.constant 0 : index
    %c0_91 = arith.constant 0 : index
    %c0_92 = arith.constant 0 : index
    %148 = vector.load %arg9[%c0_90, %c0_91, %c0_92] : memref<3x128x128xbf16, #tpu.memory_space<vmem>>, vector<1x128x128xbf16>
    %149 = vector.shape_cast %148 : vector<1x128x128xbf16> to vector<128x128xbf16>
    %cst_93 = arith.constant dense<0.000000e+00> : vector<8x128xf32>
    %150 = tpu.matmul %147, %149, %cst_93 {dimension_numbers = #tpu.dot_dimension_numbers<[1], [0], [0], [1], [0, 0, 1, 1], [], []>} : vector<8x128xbf16>, vector<128x128xbf16>, vector<8x128xf32> -> vector<8x128xf32>
    %151 = arith.addf %143, %150 : vector<8x128xf32>
    %c1_94 = arith.constant 1 : index
    %c0_95 = arith.constant 0 : index
    %c0_96 = arith.constant 0 : index
    %152 = vector.load %arg8[%c1_94, %c0_95, %c0_96] : memref<3x8x16xbf16, #tpu.memory_space<vmem>>, vector<1x8x16xbf16>
    %153 = vector.shape_cast %152 : vector<1x8x16xbf16> to vector<8x16xbf16>
    %cst_97 = arith.constant dense<0.000000e+00> : vector<8x128xf32>
    %154 = tpu.matmul %153, %142, %cst_97 {dimension_numbers = #tpu.dot_dimension_numbers<[1], [0], [0], [1], [0, 0, 1, 1], [], []>} : vector<8x16xbf16>, vector<16x128xbf16>, vector<8x128xf32> -> vector<8x128xf32>
    %155 = arith.truncf %154 : vector<8x128xf32> to vector<8x128xbf16>
    %c1_98 = arith.constant 1 : index
    %c0_99 = arith.constant 0 : index
    %c0_100 = arith.constant 0 : index
    %156 = vector.load %arg9[%c1_98, %c0_99, %c0_100] : memref<3x128x128xbf16, #tpu.memory_space<vmem>>, vector<1x128x128xbf16>
    %157 = vector.shape_cast %156 : vector<1x128x128xbf16> to vector<128x128xbf16>
    %cst_101 = arith.constant dense<0.000000e+00> : vector<8x128xf32>
    %158 = tpu.matmul %155, %157, %cst_101 {dimension_numbers = #tpu.dot_dimension_numbers<[1], [0], [0], [1], [0, 0, 1, 1], [], []>} : vector<8x128xbf16>, vector<128x128xbf16>, vector<8x128xf32> -> vector<8x128xf32>
    %159 = arith.addf %151, %158 : vector<8x128xf32>
    %c2_102 = arith.constant 2 : index
    %c0_103 = arith.constant 0 : index
    %c0_104 = arith.constant 0 : index
    %160 = vector.load %arg8[%c2_102, %c0_103, %c0_104] : memref<3x8x16xbf16, #tpu.memory_space<vmem>>, vector<1x8x16xbf16>
    %161 = vector.shape_cast %160 : vector<1x8x16xbf16> to vector<8x16xbf16>
    %cst_105 = arith.constant dense<0.000000e+00> : vector<8x128xf32>
    %162 = tpu.matmul %161, %142, %cst_105 {dimension_numbers = #tpu.dot_dimension_numbers<[1], [0], [0], [1], [0, 0, 1, 1], [], []>} : vector<8x16xbf16>, vector<16x128xbf16>, vector<8x128xf32> -> vector<8x128xf32>
    %163 = arith.truncf %162 : vector<8x128xf32> to vector<8x128xbf16>
    %c2_106 = arith.constant 2 : index
    %c0_107 = arith.constant 0 : index
    %c0_108 = arith.constant 0 : index
    %164 = vector.load %arg9[%c2_106, %c0_107, %c0_108] : memref<3x128x128xbf16, #tpu.memory_space<vmem>>, vector<1x128x128xbf16>
    %165 = vector.shape_cast %164 : vector<1x128x128xbf16> to vector<128x128xbf16>
    %cst_109 = arith.constant dense<0.000000e+00> : vector<8x128xf32>
    %166 = tpu.matmul %163, %165, %cst_109 {dimension_numbers = #tpu.dot_dimension_numbers<[1], [0], [0], [1], [0, 0, 1, 1], [], []>} : vector<8x128xbf16>, vector<128x128xbf16>, vector<8x128xf32> -> vector<8x128xf32>
    %167 = arith.addf %159, %166 : vector<8x128xf32>
    %c0_110 = arith.constant 0 : index
    %c0_111 = arith.constant 0 : index
    %168 = vector.load %arg10[%c0_110, %c0_111] : memref<1x128xf32, #tpu.memory_space<vmem>>, vector<1x128xf32>
    %169 = vector.broadcast %168 : vector<1x128xf32> to vector<8x128xf32>
    %170 = arith.addf %167, %169 : vector<8x128xf32>
    %cst_112 = arith.constant 0.707106769 : f32
    %171 = vector.broadcast %cst_112 : f32 to vector<8x128xf32>
    %172 = arith.mulf %170, %171 : vector<8x128xf32>
    %cst_113 = arith.constant 0.000000e+00 : f32
    %173 = vector.broadcast %cst_113 : f32 to vector<8x128xf32>
    %174 = arith.cmpf olt, %172, %173 : vector<8x128xf32>
    %cst_114 = arith.constant -1.000000e+00 : f32
    %cst_115 = arith.constant 1.000000e+00 : f32
    %175 = vector.broadcast %cst_114 : f32 to vector<8x128xf32>
    %176 = vector.broadcast %cst_115 : f32 to vector<8x128xf32>
    %177 = arith.select %174, %175, %176 : vector<8x128xi1>, vector<8x128xf32>
    %178 = math.absf %172 : vector<8x128xf32>
    %cst_116 = arith.constant 0.327591091 : f32
    %179 = vector.broadcast %cst_116 : f32 to vector<8x128xf32>
    %180 = arith.mulf %179, %178 : vector<8x128xf32>
    %cst_117 = arith.constant 1.000000e+00 : f32
    %181 = vector.broadcast %cst_117 : f32 to vector<8x128xf32>
    %182 = arith.addf %181, %180 : vector<8x128xf32>
    %cst_118 = arith.constant 1.000000e+00 : f32
    %183 = vector.broadcast %cst_118 : f32 to vector<8x128xf32>
    %184 = arith.divf %183, %182 : vector<8x128xf32>
    %cst_119 = arith.constant 1.06140542 : f32
    %185 = vector.broadcast %cst_119 : f32 to vector<8x128xf32>
    %186 = arith.mulf %185, %184 : vector<8x128xf32>
    %cst_120 = arith.constant -1.45315206 : f32
    %187 = vector.broadcast %cst_120 : f32 to vector<8x128xf32>
    %188 = arith.addf %186, %187 : vector<8x128xf32>
    %189 = arith.mulf %188, %184 : vector<8x128xf32>
    %cst_121 = arith.constant 1.42141378 : f32
    %190 = vector.broadcast %cst_121 : f32 to vector<8x128xf32>
    %191 = arith.addf %189, %190 : vector<8x128xf32>
    %192 = arith.mulf %191, %184 : vector<8x128xf32>
    %cst_122 = arith.constant -0.284496725 : f32
    %193 = vector.broadcast %cst_122 : f32 to vector<8x128xf32>
    %194 = arith.addf %192, %193 : vector<8x128xf32>
    %195 = arith.mulf %194, %184 : vector<8x128xf32>
    %cst_123 = arith.constant 0.254829586 : f32
    %196 = vector.broadcast %cst_123 : f32 to vector<8x128xf32>
    %197 = arith.addf %195, %196 : vector<8x128xf32>
    %198 = arith.mulf %197, %184 : vector<8x128xf32>
    %cst_124 = arith.constant 0.000000e+00 : f32
    %199 = vector.broadcast %cst_124 : f32 to vector<8x128xf32>
    %200 = arith.subf %199, %178 : vector<8x128xf32>
    %201 = arith.mulf %200, %178 : vector<8x128xf32>
    %202 = math.exp %201 : vector<8x128xf32>
    %203 = arith.mulf %198, %202 : vector<8x128xf32>
    %cst_125 = arith.constant 1.000000e+00 : f32
    %204 = vector.broadcast %cst_125 : f32 to vector<8x128xf32>
    %205 = arith.subf %204, %203 : vector<8x128xf32>
    %206 = arith.mulf %177, %205 : vector<8x128xf32>
    %cst_126 = arith.constant 5.000000e-01 : f32
    %207 = vector.broadcast %cst_126 : f32 to vector<8x128xf32>
    %208 = arith.mulf %207, %170 : vector<8x128xf32>
    %cst_127 = arith.constant 1.000000e+00 : f32
    %209 = vector.broadcast %cst_127 : f32 to vector<8x128xf32>
    %210 = arith.addf %209, %206 : vector<8x128xf32>
    %211 = arith.mulf %208, %210 : vector<8x128xf32>
    %212 = arith.truncf %211 : vector<8x128xf32> to vector<8x128xbf16>
    %cst_128 = arith.constant 0.000000e+00 : f32
    %213 = vector.broadcast %cst_128 : f32 to vector<8x128xf32>
    %c0_129 = arith.constant 0 : index
    %c0_130 = arith.constant 0 : index
    %c0_131 = arith.constant 0 : index
    %214 = vector.load %arg11[%c0_129, %c0_130, %c0_131] : memref<3x8x8xbf16, #tpu.memory_space<vmem>>, vector<1x8x8xbf16>
    %215 = vector.shape_cast %214 : vector<1x8x8xbf16> to vector<8x8xbf16>
    %cst_132 = arith.constant dense<0.000000e+00> : vector<8x128xf32>
    %216 = tpu.matmul %215, %212, %cst_132 {dimension_numbers = #tpu.dot_dimension_numbers<[1], [0], [0], [1], [0, 0, 1, 1], [], []>} : vector<8x8xbf16>, vector<8x128xbf16>, vector<8x128xf32> -> vector<8x128xf32>
    %217 = arith.truncf %216 : vector<8x128xf32> to vector<8x128xbf16>
    %c0_133 = arith.constant 0 : index
    %c0_134 = arith.constant 0 : index
    %c0_135 = arith.constant 0 : index
    %218 = vector.load %arg12[%c0_133, %c0_134, %c0_135] : memref<3x128x128xbf16, #tpu.memory_space<vmem>>, vector<1x128x128xbf16>
    %219 = vector.shape_cast %218 : vector<1x128x128xbf16> to vector<128x128xbf16>
    %cst_136 = arith.constant dense<0.000000e+00> : vector<8x128xf32>
    %220 = tpu.matmul %217, %219, %cst_136 {dimension_numbers = #tpu.dot_dimension_numbers<[1], [0], [0], [1], [0, 0, 1, 1], [], []>} : vector<8x128xbf16>, vector<128x128xbf16>, vector<8x128xf32> -> vector<8x128xf32>
    %221 = arith.addf %213, %220 : vector<8x128xf32>
    %c1_137 = arith.constant 1 : index
    %c0_138 = arith.constant 0 : index
    %c0_139 = arith.constant 0 : index
    %222 = vector.load %arg11[%c1_137, %c0_138, %c0_139] : memref<3x8x8xbf16, #tpu.memory_space<vmem>>, vector<1x8x8xbf16>
    %223 = vector.shape_cast %222 : vector<1x8x8xbf16> to vector<8x8xbf16>
    %cst_140 = arith.constant dense<0.000000e+00> : vector<8x128xf32>
    %224 = tpu.matmul %223, %212, %cst_140 {dimension_numbers = #tpu.dot_dimension_numbers<[1], [0], [0], [1], [0, 0, 1, 1], [], []>} : vector<8x8xbf16>, vector<8x128xbf16>, vector<8x128xf32> -> vector<8x128xf32>
    %225 = arith.truncf %224 : vector<8x128xf32> to vector<8x128xbf16>
    %c1_141 = arith.constant 1 : index
    %c0_142 = arith.constant 0 : index
    %c0_143 = arith.constant 0 : index
    %226 = vector.load %arg12[%c1_141, %c0_142, %c0_143] : memref<3x128x128xbf16, #tpu.memory_space<vmem>>, vector<1x128x128xbf16>
    %227 = vector.shape_cast %226 : vector<1x128x128xbf16> to vector<128x128xbf16>
    %cst_144 = arith.constant dense<0.000000e+00> : vector<8x128xf32>
    %228 = tpu.matmul %225, %227, %cst_144 {dimension_numbers = #tpu.dot_dimension_numbers<[1], [0], [0], [1], [0, 0, 1, 1], [], []>} : vector<8x128xbf16>, vector<128x128xbf16>, vector<8x128xf32> -> vector<8x128xf32>
    %229 = arith.addf %221, %228 : vector<8x128xf32>
    %c2_145 = arith.constant 2 : index
    %c0_146 = arith.constant 0 : index
    %c0_147 = arith.constant 0 : index
    %230 = vector.load %arg11[%c2_145, %c0_146, %c0_147] : memref<3x8x8xbf16, #tpu.memory_space<vmem>>, vector<1x8x8xbf16>
    %231 = vector.shape_cast %230 : vector<1x8x8xbf16> to vector<8x8xbf16>
    %cst_148 = arith.constant dense<0.000000e+00> : vector<8x128xf32>
    %232 = tpu.matmul %231, %212, %cst_148 {dimension_numbers = #tpu.dot_dimension_numbers<[1], [0], [0], [1], [0, 0, 1, 1], [], []>} : vector<8x8xbf16>, vector<8x128xbf16>, vector<8x128xf32> -> vector<8x128xf32>
    %233 = arith.truncf %232 : vector<8x128xf32> to vector<8x128xbf16>
    %c2_149 = arith.constant 2 : index
    %c0_150 = arith.constant 0 : index
    %c0_151 = arith.constant 0 : index
    %234 = vector.load %arg12[%c2_149, %c0_150, %c0_151] : memref<3x128x128xbf16, #tpu.memory_space<vmem>>, vector<1x128x128xbf16>
    %235 = vector.shape_cast %234 : vector<1x128x128xbf16> to vector<128x128xbf16>
    %cst_152 = arith.constant dense<0.000000e+00> : vector<8x128xf32>
    %236 = tpu.matmul %233, %235, %cst_152 {dimension_numbers = #tpu.dot_dimension_numbers<[1], [0], [0], [1], [0, 0, 1, 1], [], []>} : vector<8x128xbf16>, vector<128x128xbf16>, vector<8x128xf32> -> vector<8x128xf32>
    %237 = arith.addf %229, %236 : vector<8x128xf32>
    %c0_153 = arith.constant 0 : index
    %c0_154 = arith.constant 0 : index
    %238 = vector.load %arg13[%c0_153, %c0_154] : memref<1x128xf32, #tpu.memory_space<vmem>>, vector<1x128xf32>
    %239 = vector.broadcast %238 : vector<1x128xf32> to vector<8x128xf32>
    %240 = arith.addf %237, %239 : vector<8x128xf32>
    %cst_155 = arith.constant 0.707106769 : f32
    %241 = vector.broadcast %cst_155 : f32 to vector<8x128xf32>
    %242 = arith.mulf %240, %241 : vector<8x128xf32>
    %cst_156 = arith.constant 0.000000e+00 : f32
    %243 = vector.broadcast %cst_156 : f32 to vector<8x128xf32>
    %244 = arith.cmpf olt, %242, %243 : vector<8x128xf32>
    %cst_157 = arith.constant -1.000000e+00 : f32
    %cst_158 = arith.constant 1.000000e+00 : f32
    %245 = vector.broadcast %cst_157 : f32 to vector<8x128xf32>
    %246 = vector.broadcast %cst_158 : f32 to vector<8x128xf32>
    %247 = arith.select %244, %245, %246 : vector<8x128xi1>, vector<8x128xf32>
    %248 = math.absf %242 : vector<8x128xf32>
    %cst_159 = arith.constant 0.327591091 : f32
    %249 = vector.broadcast %cst_159 : f32 to vector<8x128xf32>
    %250 = arith.mulf %249, %248 : vector<8x128xf32>
    %cst_160 = arith.constant 1.000000e+00 : f32
    %251 = vector.broadcast %cst_160 : f32 to vector<8x128xf32>
    %252 = arith.addf %251, %250 : vector<8x128xf32>
    %cst_161 = arith.constant 1.000000e+00 : f32
    %253 = vector.broadcast %cst_161 : f32 to vector<8x128xf32>
    %254 = arith.divf %253, %252 : vector<8x128xf32>
    %cst_162 = arith.constant 1.06140542 : f32
    %255 = vector.broadcast %cst_162 : f32 to vector<8x128xf32>
    %256 = arith.mulf %255, %254 : vector<8x128xf32>
    %cst_163 = arith.constant -1.45315206 : f32
    %257 = vector.broadcast %cst_163 : f32 to vector<8x128xf32>
    %258 = arith.addf %256, %257 : vector<8x128xf32>
    %259 = arith.mulf %258, %254 : vector<8x128xf32>
    %cst_164 = arith.constant 1.42141378 : f32
    %260 = vector.broadcast %cst_164 : f32 to vector<8x128xf32>
    %261 = arith.addf %259, %260 : vector<8x128xf32>
    %262 = arith.mulf %261, %254 : vector<8x128xf32>
    %cst_165 = arith.constant -0.284496725 : f32
    %263 = vector.broadcast %cst_165 : f32 to vector<8x128xf32>
    %264 = arith.addf %262, %263 : vector<8x128xf32>
    %265 = arith.mulf %264, %254 : vector<8x128xf32>
    %cst_166 = arith.constant 0.254829586 : f32
    %266 = vector.broadcast %cst_166 : f32 to vector<8x128xf32>
    %267 = arith.addf %265, %266 : vector<8x128xf32>
    %268 = arith.mulf %267, %254 : vector<8x128xf32>
    %cst_167 = arith.constant 0.000000e+00 : f32
    %269 = vector.broadcast %cst_167 : f32 to vector<8x128xf32>
    %270 = arith.subf %269, %248 : vector<8x128xf32>
    %271 = arith.mulf %270, %248 : vector<8x128xf32>
    %272 = math.exp %271 : vector<8x128xf32>
    %273 = arith.mulf %268, %272 : vector<8x128xf32>
    %cst_168 = arith.constant 1.000000e+00 : f32
    %274 = vector.broadcast %cst_168 : f32 to vector<8x128xf32>
    %275 = arith.subf %274, %273 : vector<8x128xf32>
    %276 = arith.mulf %247, %275 : vector<8x128xf32>
    %cst_169 = arith.constant 5.000000e-01 : f32
    %277 = vector.broadcast %cst_169 : f32 to vector<8x128xf32>
    %278 = arith.mulf %277, %240 : vector<8x128xf32>
    %cst_170 = arith.constant 1.000000e+00 : f32
    %279 = vector.broadcast %cst_170 : f32 to vector<8x128xf32>
    %280 = arith.addf %279, %276 : vector<8x128xf32>
    %281 = arith.mulf %278, %280 : vector<8x128xf32>
    %282 = arith.truncf %281 : vector<8x128xf32> to vector<8x128xbf16>
    %cst_171 = arith.constant 0.000000e+00 : f32
    %283 = vector.broadcast %cst_171 : f32 to vector<4x64xf32>
    %c0_172 = arith.constant 0 : index
    %c0_173 = arith.constant 0 : index
    %c0_174 = arith.constant 0 : index
    %284 = vector.load %arg14[%c0_172, %c0_173, %c0_174] : memref<3x4x8xbf16, #tpu.memory_space<vmem>>, vector<1x4x8xbf16>
    %285 = vector.shape_cast %284 : vector<1x4x8xbf16> to vector<4x8xbf16>
    %cst_175 = arith.constant dense<0.000000e+00> : vector<4x128xf32>
    %286 = tpu.matmul %285, %282, %cst_175 {dimension_numbers = #tpu.dot_dimension_numbers<[1], [0], [0], [1], [0, 0, 1, 1], [], []>} : vector<4x8xbf16>, vector<8x128xbf16>, vector<4x128xf32> -> vector<4x128xf32>
    %287 = arith.truncf %286 : vector<4x128xf32> to vector<4x128xbf16>
    %c0_176 = arith.constant 0 : index
    %c0_177 = arith.constant 0 : index
    %c0_178 = arith.constant 0 : index
    %288 = vector.load %arg15[%c0_176, %c0_177, %c0_178] : memref<3x128x64xbf16, #tpu.memory_space<vmem>>, vector<1x128x64xbf16>
    %289 = vector.shape_cast %288 : vector<1x128x64xbf16> to vector<128x64xbf16>
    %cst_179 = arith.constant dense<0.000000e+00> : vector<4x64xf32>
    %290 = tpu.matmul %287, %289, %cst_179 {dimension_numbers = #tpu.dot_dimension_numbers<[1], [0], [0], [1], [0, 0, 1, 1], [], []>} : vector<4x128xbf16>, vector<128x64xbf16>, vector<4x64xf32> -> vector<4x64xf32>
    %291 = arith.addf %283, %290 : vector<4x64xf32>
    %c1_180 = arith.constant 1 : index
    %c0_181 = arith.constant 0 : index
    %c0_182 = arith.constant 0 : index
    %292 = vector.load %arg14[%c1_180, %c0_181, %c0_182] : memref<3x4x8xbf16, #tpu.memory_space<vmem>>, vector<1x4x8xbf16>
    %293 = vector.shape_cast %292 : vector<1x4x8xbf16> to vector<4x8xbf16>
    %cst_183 = arith.constant dense<0.000000e+00> : vector<4x128xf32>
    %294 = tpu.matmul %293, %282, %cst_183 {dimension_numbers = #tpu.dot_dimension_numbers<[1], [0], [0], [1], [0, 0, 1, 1], [], []>} : vector<4x8xbf16>, vector<8x128xbf16>, vector<4x128xf32> -> vector<4x128xf32>
    %295 = arith.truncf %294 : vector<4x128xf32> to vector<4x128xbf16>
    %c1_184 = arith.constant 1 : index
    %c0_185 = arith.constant 0 : index
    %c0_186 = arith.constant 0 : index
    %296 = vector.load %arg15[%c1_184, %c0_185, %c0_186] : memref<3x128x64xbf16, #tpu.memory_space<vmem>>, vector<1x128x64xbf16>
    %297 = vector.shape_cast %296 : vector<1x128x64xbf16> to vector<128x64xbf16>
    %cst_187 = arith.constant dense<0.000000e+00> : vector<4x64xf32>
    %298 = tpu.matmul %295, %297, %cst_187 {dimension_numbers = #tpu.dot_dimension_numbers<[1], [0], [0], [1], [0, 0, 1, 1], [], []>} : vector<4x128xbf16>, vector<128x64xbf16>, vector<4x64xf32> -> vector<4x64xf32>
    %299 = arith.addf %291, %298 : vector<4x64xf32>
    %c2_188 = arith.constant 2 : index
    %c0_189 = arith.constant 0 : index
    %c0_190 = arith.constant 0 : index
    %300 = vector.load %arg14[%c2_188, %c0_189, %c0_190] : memref<3x4x8xbf16, #tpu.memory_space<vmem>>, vector<1x4x8xbf16>
    %301 = vector.shape_cast %300 : vector<1x4x8xbf16> to vector<4x8xbf16>
    %cst_191 = arith.constant dense<0.000000e+00> : vector<4x128xf32>
    %302 = tpu.matmul %301, %282, %cst_191 {dimension_numbers = #tpu.dot_dimension_numbers<[1], [0], [0], [1], [0, 0, 1, 1], [], []>} : vector<4x8xbf16>, vector<8x128xbf16>, vector<4x128xf32> -> vector<4x128xf32>
    %303 = arith.truncf %302 : vector<4x128xf32> to vector<4x128xbf16>
    %c2_192 = arith.constant 2 : index
    %c0_193 = arith.constant 0 : index
    %c0_194 = arith.constant 0 : index
    %304 = vector.load %arg15[%c2_192, %c0_193, %c0_194] : memref<3x128x64xbf16, #tpu.memory_space<vmem>>, vector<1x128x64xbf16>
    %305 = vector.shape_cast %304 : vector<1x128x64xbf16> to vector<128x64xbf16>
    %cst_195 = arith.constant dense<0.000000e+00> : vector<4x64xf32>
    %306 = tpu.matmul %303, %305, %cst_195 {dimension_numbers = #tpu.dot_dimension_numbers<[1], [0], [0], [1], [0, 0, 1, 1], [], []>} : vector<4x128xbf16>, vector<128x64xbf16>, vector<4x64xf32> -> vector<4x64xf32>
    %307 = arith.addf %299, %306 : vector<4x64xf32>
    %c0_196 = arith.constant 0 : index
    %c0_197 = arith.constant 0 : index
    %308 = vector.load %arg16[%c0_196, %c0_197] : memref<1x64xf32, #tpu.memory_space<vmem>>, vector<1x64xf32>
    %309 = vector.broadcast %308 : vector<1x64xf32> to vector<4x64xf32>
    %310 = arith.addf %307, %309 : vector<4x64xf32>
    %cst_198 = arith.constant 0.707106769 : f32
    %311 = vector.broadcast %cst_198 : f32 to vector<4x64xf32>
    %312 = arith.mulf %310, %311 : vector<4x64xf32>
    %cst_199 = arith.constant 0.000000e+00 : f32
    %313 = vector.broadcast %cst_199 : f32 to vector<4x64xf32>
    %314 = arith.cmpf olt, %312, %313 : vector<4x64xf32>
    %cst_200 = arith.constant -1.000000e+00 : f32
    %cst_201 = arith.constant 1.000000e+00 : f32
    %315 = vector.broadcast %cst_200 : f32 to vector<4x64xf32>
    %316 = vector.broadcast %cst_201 : f32 to vector<4x64xf32>
    %317 = arith.select %314, %315, %316 : vector<4x64xi1>, vector<4x64xf32>
    %318 = math.absf %312 : vector<4x64xf32>
    %cst_202 = arith.constant 0.327591091 : f32
    %319 = vector.broadcast %cst_202 : f32 to vector<4x64xf32>
    %320 = arith.mulf %319, %318 : vector<4x64xf32>
    %cst_203 = arith.constant 1.000000e+00 : f32
    %321 = vector.broadcast %cst_203 : f32 to vector<4x64xf32>
    %322 = arith.addf %321, %320 : vector<4x64xf32>
    %cst_204 = arith.constant 1.000000e+00 : f32
    %323 = vector.broadcast %cst_204 : f32 to vector<4x64xf32>
    %324 = arith.divf %323, %322 : vector<4x64xf32>
    %cst_205 = arith.constant 1.06140542 : f32
    %325 = vector.broadcast %cst_205 : f32 to vector<4x64xf32>
    %326 = arith.mulf %325, %324 : vector<4x64xf32>
    %cst_206 = arith.constant -1.45315206 : f32
    %327 = vector.broadcast %cst_206 : f32 to vector<4x64xf32>
    %328 = arith.addf %326, %327 : vector<4x64xf32>
    %329 = arith.mulf %328, %324 : vector<4x64xf32>
    %cst_207 = arith.constant 1.42141378 : f32
    %330 = vector.broadcast %cst_207 : f32 to vector<4x64xf32>
    %331 = arith.addf %329, %330 : vector<4x64xf32>
    %332 = arith.mulf %331, %324 : vector<4x64xf32>
    %cst_208 = arith.constant -0.284496725 : f32
    %333 = vector.broadcast %cst_208 : f32 to vector<4x64xf32>
    %334 = arith.addf %332, %333 : vector<4x64xf32>
    %335 = arith.mulf %334, %324 : vector<4x64xf32>
    %cst_209 = arith.constant 0.254829586 : f32
    %336 = vector.broadcast %cst_209 : f32 to vector<4x64xf32>
    %337 = arith.addf %335, %336 : vector<4x64xf32>
    %338 = arith.mulf %337, %324 : vector<4x64xf32>
    %cst_210 = arith.constant 0.000000e+00 : f32
    %339 = vector.broadcast %cst_210 : f32 to vector<4x64xf32>
    %340 = arith.subf %339, %318 : vector<4x64xf32>
    %341 = arith.mulf %340, %318 : vector<4x64xf32>
    %342 = math.exp %341 : vector<4x64xf32>
    %343 = arith.mulf %338, %342 : vector<4x64xf32>
    %cst_211 = arith.constant 1.000000e+00 : f32
    %344 = vector.broadcast %cst_211 : f32 to vector<4x64xf32>
    %345 = arith.subf %344, %343 : vector<4x64xf32>
    %346 = arith.mulf %317, %345 : vector<4x64xf32>
    %cst_212 = arith.constant 5.000000e-01 : f32
    %347 = vector.broadcast %cst_212 : f32 to vector<4x64xf32>
    %348 = arith.mulf %347, %310 : vector<4x64xf32>
    %cst_213 = arith.constant 1.000000e+00 : f32
    %349 = vector.broadcast %cst_213 : f32 to vector<4x64xf32>
    %350 = arith.addf %349, %346 : vector<4x64xf32>
    %351 = arith.mulf %348, %350 : vector<4x64xf32>
    %352 = arith.truncf %351 : vector<4x64xf32> to vector<4x64xbf16>
    %c0_214 = arith.constant 0 : index
    %c0_215 = arith.constant 0 : index
    %353 = vector.load %arg18[%c0_214, %c0_215] : memref<1x32xf32, #tpu.memory_space<vmem>>, vector<1x32xf32>
    %c0_216 = arith.constant 0 : index
    %c0_217 = arith.constant 0 : index
    %c0_218 = arith.constant 0 : index
    %354 = vector.load %arg17[%c0_216, %c0_217, %c0_218] : memref<4x64x32xbf16, #tpu.memory_space<vmem>>, vector<1x64x32xbf16>
    %355 = vector.shape_cast %354 : vector<1x64x32xbf16> to vector<64x32xbf16>
    %cst_219 = arith.constant dense<0.000000e+00> : vector<4x32xf32>
    %356 = tpu.matmul %352, %355, %cst_219 {dimension_numbers = #tpu.dot_dimension_numbers<[1], [0], [0], [1], [0, 0, 1, 1], [], []>} : vector<4x64xbf16>, vector<64x32xbf16>, vector<4x32xf32> -> vector<4x32xf32>
    %357 = vector.extract_strided_slice %356 {offsets = [0, 0], sizes = [1, 32], strides = [1, 1]} : vector<4x32xf32> to vector<1x32xf32>
    %358 = arith.addf %353, %357 : vector<1x32xf32>
    %c1_220 = arith.constant 1 : index
    %c0_221 = arith.constant 0 : index
    %c0_222 = arith.constant 0 : index
    %359 = vector.load %arg17[%c1_220, %c0_221, %c0_222] : memref<4x64x32xbf16, #tpu.memory_space<vmem>>, vector<1x64x32xbf16>
    %360 = vector.shape_cast %359 : vector<1x64x32xbf16> to vector<64x32xbf16>
    %cst_223 = arith.constant dense<0.000000e+00> : vector<4x32xf32>
    %361 = tpu.matmul %352, %360, %cst_223 {dimension_numbers = #tpu.dot_dimension_numbers<[1], [0], [0], [1], [0, 0, 1, 1], [], []>} : vector<4x64xbf16>, vector<64x32xbf16>, vector<4x32xf32> -> vector<4x32xf32>
    %362 = vector.extract_strided_slice %361 {offsets = [1, 0], sizes = [1, 32], strides = [1, 1]} : vector<4x32xf32> to vector<1x32xf32>
    %363 = arith.addf %358, %362 : vector<1x32xf32>
    %c2_224 = arith.constant 2 : index
    %c0_225 = arith.constant 0 : index
    %c0_226 = arith.constant 0 : index
    %364 = vector.load %arg17[%c2_224, %c0_225, %c0_226] : memref<4x64x32xbf16, #tpu.memory_space<vmem>>, vector<1x64x32xbf16>
    %365 = vector.shape_cast %364 : vector<1x64x32xbf16> to vector<64x32xbf16>
    %cst_227 = arith.constant dense<0.000000e+00> : vector<4x32xf32>
    %366 = tpu.matmul %352, %365, %cst_227 {dimension_numbers = #tpu.dot_dimension_numbers<[1], [0], [0], [1], [0, 0, 1, 1], [], []>} : vector<4x64xbf16>, vector<64x32xbf16>, vector<4x32xf32> -> vector<4x32xf32>
    %367 = vector.extract_strided_slice %366 {offsets = [2, 0], sizes = [1, 32], strides = [1, 1]} : vector<4x32xf32> to vector<1x32xf32>
    %368 = arith.addf %363, %367 : vector<1x32xf32>
    %c3 = arith.constant 3 : index
    %c0_228 = arith.constant 0 : index
    %c0_229 = arith.constant 0 : index
    %369 = vector.load %arg17[%c3, %c0_228, %c0_229] : memref<4x64x32xbf16, #tpu.memory_space<vmem>>, vector<1x64x32xbf16>
    %370 = vector.shape_cast %369 : vector<1x64x32xbf16> to vector<64x32xbf16>
    %cst_230 = arith.constant dense<0.000000e+00> : vector<4x32xf32>
    %371 = tpu.matmul %352, %370, %cst_230 {dimension_numbers = #tpu.dot_dimension_numbers<[1], [0], [0], [1], [0, 0, 1, 1], [], []>} : vector<4x64xbf16>, vector<64x32xbf16>, vector<4x32xf32> -> vector<4x32xf32>
    %372 = vector.extract_strided_slice %371 {offsets = [3, 0], sizes = [1, 32], strides = [1, 1]} : vector<4x32xf32> to vector<1x32xf32>
    %373 = arith.addf %368, %372 : vector<1x32xf32>
    %c0_231 = arith.constant 0 : index
    %c0_232 = arith.constant 0 : index
    %c0_233 = arith.constant 0 : index
    %374 = vector.load %arg19[%c0_231, %c0_232, %c0_233] : memref<1x1x32xf32, #tpu.memory_space<vmem>>, vector<1x1x32xf32>
    %375 = vector.shape_cast %374 : vector<1x1x32xf32> to vector<1x32xf32>
    %376 = vector.shape_cast %373 : vector<1x32xf32> to vector<1x1x32xf32>
    tpu.vector_store %arg19[%c0_231, %c0_232, %c0_233], %376 {strides = array<i32>} : memref<1x1x32xf32, #tpu.memory_space<vmem>>, vector<1x1x32xf32>,
    return
  }
  func.func @transform_0(%arg0: i32) -> (i32, i32, i32) {
    %c0_i32 = arith.constant 0 : i32
    %c0_i32_0 = arith.constant 0 : i32
    %c0_i32_1 = arith.constant 0 : i32
    return %arg0, %c0_i32, %c0_i32_0 : i32, i32, i32
  }
  func.func @transform_1(%arg0: i32) -> (i32, i32, i32) {
    %c0_i32 = arith.constant 0 : i32
    %c0_i32_0 = arith.constant 0 : i32
    %c0_i32_1 = arith.constant 0 : i32
    %c0_i32_2 = arith.constant 0 : i32
    return %c0_i32, %c0_i32_0, %c0_i32_1 : i32, i32, i32
  }
  func.func @transform_2(%arg0: i32) -> (i32, i32, i32) {
    %c0_i32 = arith.constant 0 : i32
    %c0_i32_0 = arith.constant 0 : i32
    %c0_i32_1 = arith.constant 0 : i32
    %c0_i32_2 = arith.constant 0 : i32
    return %c0_i32, %c0_i32_0, %c0_i32_1 : i32, i32, i32
  }
  func.func @transform_3(%arg0: i32) -> (i32, i32) {
    %c0_i32 = arith.constant 0 : i32
    %c0_i32_0 = arith.constant 0 : i32
    %c0_i32_1 = arith.constant 0 : i32
    return %c0_i32, %c0_i32_0 : i32, i32
  }
  func.func @transform_4(%arg0: i32) -> (i32, i32, i32) {
    %c0_i32 = arith.constant 0 : i32
    %c0_i32_0 = arith.constant 0 : i32
    %c0_i32_1 = arith.constant 0 : i32
    %c0_i32_2 = arith.constant 0 : i32
    return %c0_i32, %c0_i32_0, %c0_i32_1 : i32, i32, i32
  }
  func.func @transform_5(%arg0: i32) -> (i32, i32, i32) {
    %c0_i32 = arith.constant 0 : i32
    %c0_i32_0 = arith.constant 0 : i32
    %c0_i32_1 = arith.constant 0 : i32
    %c0_i32_2 = arith.constant 0 : i32
    return %c0_i32, %c0_i32_0, %c0_i32_1 : i32, i32, i32
  }
  func.func @transform_6(%arg0: i32) -> (i32, i32) {
    %c0_i32 = arith.constant 0 : i32
    %c0_i32_0 = arith.constant 0 : i32
    %c0_i32_1 = arith.constant 0 : i32
    return %c0_i32, %c0_i32_0 : i32, i32
  }
  func.func @transform_7(%arg0: i32) -> (i32, i32, i32) {
    %c0_i32 = arith.constant 0 : i32
    %c0_i32_0 = arith.constant 0 : i32
    %c0_i32_1 = arith.constant 0 : i32
    %c0_i32_2 = arith.constant 0 : i32
    return %c0_i32, %c0_i32_0, %c0_i32_1 : i32, i32, i32
  }
  func.func @transform_8(%arg0: i32) -> (i32, i32, i32) {
    %c0_i32 = arith.constant 0 : i32
    %c0_i32_0 = arith.constant 0 : i32
    %c0_i32_1 = arith.constant 0 : i32
    %c0_i32_2 = arith.constant 0 : i32
    return %c0_i32, %c0_i32_0, %c0_i32_1 : i32, i32, i32
  }
  func.func @transform_9(%arg0: i32) -> (i32, i32) {
    %c0_i32 = arith.constant 0 : i32
    %c0_i32_0 = arith.constant 0 : i32
    %c0_i32_1 = arith.constant 0 : i32
    return %c0_i32, %c0_i32_0 : i32, i32
  }
  func.func @transform_10(%arg0: i32) -> (i32, i32, i32) {
    %c0_i32 = arith.constant 0 : i32
    %c0_i32_0 = arith.constant 0 : i32
    %c0_i32_1 = arith.constant 0 : i32
    %c0_i32_2 = arith.constant 0 : i32
    return %c0_i32, %c0_i32_0, %c0_i32_1 : i32, i32, i32
  }
  func.func @transform_11(%arg0: i32) -> (i32, i32, i32) {
    %c0_i32 = arith.constant 0 : i32
    %c0_i32_0 = arith.constant 0 : i32
    %c0_i32_1 = arith.constant 0 : i32
    %c0_i32_2 = arith.constant 0 : i32
    return %c0_i32, %c0_i32_0, %c0_i32_1 : i32, i32, i32
  }
  func.func @transform_12(%arg0: i32) -> (i32, i32) {
    %c0_i32 = arith.constant 0 : i32
    %c0_i32_0 = arith.constant 0 : i32
    %c0_i32_1 = arith.constant 0 : i32
    return %c0_i32, %c0_i32_0 : i32, i32
  }
  func.func @transform_13(%arg0: i32) -> (i32, i32, i32) {
    %c0_i32 = arith.constant 0 : i32
    %c0_i32_0 = arith.constant 0 : i32
    %c0_i32_1 = arith.constant 0 : i32
    %c0_i32_2 = arith.constant 0 : i32
    return %c0_i32, %c0_i32_0, %c0_i32_1 : i32, i32, i32
  }
  func.func @transform_14(%arg0: i32) -> (i32, i32, i32) {
    %c0_i32 = arith.constant 0 : i32
    %c0_i32_0 = arith.constant 0 : i32
    %c0_i32_1 = arith.constant 0 : i32
    %c0_i32_2 = arith.constant 0 : i32
    return %c0_i32, %c0_i32_0, %c0_i32_1 : i32, i32, i32
  }
  func.func @transform_15(%arg0: i32) -> (i32, i32) {
    %c0_i32 = arith.constant 0 : i32
    %c0_i32_0 = arith.constant 0 : i32
    %c0_i32_1 = arith.constant 0 : i32
    return %c0_i32, %c0_i32_0 : i32, i32
  }
  func.func @transform_16(%arg0: i32) -> (i32, i32, i32) {
    %c0_i32 = arith.constant 0 : i32
    %c0_i32_0 = arith.constant 0 : i32
    %c0_i32_1 = arith.constant 0 : i32
    %c0_i32_2 = arith.constant 0 : i32
    return %c0_i32, %c0_i32_0, %c0_i32_1 : i32, i32, i32
  }
  func.func @transform_17(%arg0: i32) -> (i32, i32) {
    %c0_i32 = arith.constant 0 : i32
    %c0_i32_0 = arith.constant 0 : i32
    %c0_i32_1 = arith.constant 0 : i32
    return %c0_i32, %c0_i32_0 : i32, i32
  }
  func.func @transform_18(%arg0: i32) -> (i32, i32, i32) {
    %c0_i32 = arith.constant 0 : i32
    %c0_i32_0 = arith.constant 0 : i32
    %c0_i32_1 = arith.constant 0 : i32
    return %arg0, %c0_i32, %c0_i32_0 : i32, i32, i32
  }
}

</mosaic_0001>

<bundles_post_ra>
// kernel: encoder_forward.1
= control target key start
LH: loop header
LB: loop body
LE: loop exit
PB: predicated region body
PF: predicated region fallthrough
CT: control target
= control target key end

     0   :  { %s6371_s0 = inlined_call_operand.vmem [shape: f32[2,32,96], index: 0, kind: input, shape index: {}]   ;;  %s6372_s1 = inlined_call_operand.hbm [shape: bf16[3,16,32], index: 1, kind: input, shape index: {}]   ;;  %s6373_s2 = inlined_call_operand.vmem [shape: bf16[3,96,128], index: 2, kind: input, shape index: {}]   ;;  %s6374_s3 = inlined_call_operand.vmem [shape: f32[1,128], index: 3, kind: input, shape index: {}]   ;;  %s6375_s4 = inlined_call_operand.hbm [shape: bf16[3,16,16], index: 4, kind: input, shape index: {}]   ;;  %s6376_s5 = inlined_call_operand.vmem [shape: bf16[3,128,128], index: 5, kind: input, shape index: {}]   ;;  %s6377_s6 = inlined_call_operand.hbm [shape: f32[1,128], index: 6, kind: input, shape index: {}]   ;;  %s6378_s7 = inlined_call_operand.hbm [shape: bf16[3,8,16], index: 7, kind: input, shape index: {}]   ;;  %s6379_s8 = inlined_call_operand.vmem [shape: bf16[3,128,128], index: 8, kind: input, shape index: {}]   ;;  %s6380_s9 = inlined_call_operand.hbm [shape: f32[1,128], index: 9, kind: input, shape index: {}]   ;;  %s6381_s10 = inlined_call_operand.hbm [shape: bf16[3,8,8], index: 10, kind: input, shape index: {}]   ;;  %s6382_s11 = inlined_call_operand.vmem [shape: bf16[3,128,128], index: 11, kind: input, shape index: {}]   ;;  %s6383_s12 = inlined_call_operand.hbm [shape: f32[1,128], index: 12, kind: input, shape index: {}]   ;;  %s6384_s13 = inlined_call_operand.hbm [shape: bf16[3,4,8], index: 13, kind: input, shape index: {}]   ;;  %s6385_s14 = inlined_call_operand.vmem [shape: bf16[3,128,64], index: 14, kind: input, shape index: {}]   ;;  %s6386_s15 = inlined_call_operand.vmem [shape: f32[1,64], index: 15, kind: input, shape index: {}]   ;;  %s6387_s16 = inlined_call_operand.vmem [shape: bf16[4,64,32], index: 16, kind: input, shape index: {}]   ;;  %s6388_s17 = inlined_call_operand.vmem [shape: f32[1,32], index: 17, kind: input, shape index: {}]   ;;  %s6389_s18 = inlined_call_operand.hbm [shape: f32[2,1,32], index: 18, kind: output, shape index: {}]  }
   0x1   :  { %6405 = sst [smem:[#allocation31_spill]] %s6371_s0 }
   0x2   :  { %6406 = sst [smem:[#allocation32_spill]] %s6372_s1 }
   0x3   :  { %6407 = sst [smem:[#allocation33_spill]] %s6373_s2 }
   0x4   :  { %6408 = sst [smem:[#allocation34_spill]] %s6375_s4 }
   0x5   :  { %6409 = sst [smem:[#allocation35_spill]] %s6378_s7 }
   0x6   :  { %6410 = sst [smem:[#allocation36_spill]] %s6386_s15 }
   0x7   :  { %6411 = sst [smem:[#allocation37_spill]] %s6388_s17 }
   0x8   :  { %6412 = sst [smem:[#allocation38_spill]] %s6389_s18 }
   0x9   :  { %23 = vsyncpa [#allocation3], 0 }
   0xa   :  { %24 = vsyncpa [#allocation6], 0 }
   0xb   :  { %25 = vsyncpa [#allocation9], 0 }
   0xc   :  { %26 = vsyncpa [#allocation12], 0 }
   0xd   :  { %27 = vsyncpa [#allocation15], 0 }
   0xe   :  { %28 = vsyncpa [#allocation4], 0 }
   0xf   :  { %30 = vsyncpa [#allocation4 + $0x1], 0  ;;  %s5401_s27 = smov 0   ;;  %s5403_s28 = smov 0  }
  0x10   :  { %s5405_s29 = smov 0   ;;  %s5407_s30 = smov 0  }
  0x11 LB: > { %6413 = sst [smem:[#allocation23_spill]] %s5275_s27  ;;  %s5422_s0 = sadd.s32 4294967295, %s5287_s30   ;;  %s5287_s30 = sphi %s5407_s30, %s6452_s30   ;;  %s5283_s29 = sphi %s5405_s29, %s6455_s29   ;;  %s5279_s28 = sphi %s5403_s28, %s6454_s28   ;;  %s5275_s27 = sphi %s5401_s27, %s6453_s27  }
  0x12   : > { %6414 = sst [smem:[#allocation24_spill]] %s5279_s28  ;;  %s3710_s19 = sadd.s32 4294967294, %s5287_s30  }
  0x13   : > { %6415 = sst [smem:[#allocation25_spill]] %s5283_s29  ;;  %s5426_s1 = sadd.s32 1, %s5287_s30  }
  0x14   : > { %6416 = sst [smem:[#allocation26_spill]] %s5287_s30  ;;  %s426_s20 = sadd.s32 1, %s5283_s29 }
  0x15   : > { %6417 = sst [smem:[#allocation27_spill]] %s5426_s1  ;;  %s423_s21 = ssub.s32 %s5287_s30, %s5426_s1 }
  0x16   : > { %p436_p0 = scmp.ne.s32.totalorder %s5283_s29, %s5279_s28  ;;  %p424_p1 = scmp.eq.s32.totalorder %s423_s21, 0 }
  0x17   : > { %p437_p2 = scmp.eq.s32.totalorder %s5422_s0, 1  ;;  %p442_p3 = scmp.ne.s32.totalorder %s5279_s28, %s5275_s27 }
  0x18   : > { %p443_p4 = scmp.eq.s32.totalorder %s3710_s19, 1  ;;  %p3711_p7 = scmp.ge.s32.totalorder %s5287_s30, 1 }
  0x19   : > { %s5437_s22 = scalar_select %p424_p1, %s5283_s29, %s426_s20  }
  0x1a   : > { %p5439_p5 = por %p437_p2, %p436_p0  ;;  %p5443_p6 = por %p443_p4, %p442_p3 }
  0x1b   : > { %6418 = sst [smem:[#allocation28_spill]] %s5437_s22  ;;  %p450_p8 = scmp.lt.s32.totalorder %s5287_s30, 3 }
  0x1c   : > { %s6419_s2 = scalar_select %p5439_p5, 1, 0 }
  0x1d   : > { %s6421_s23 = scalar_select %p5443_p6, 1, 0 }
  0x1e   : > { %6420 = sst [smem:[#allocation29_spill]] %s6419_s2  ;;  %p6399_p9 = scmp.eq.s32.totalorder %s5422_s0, 0 }
  0x1f   : > { %6422 = sst [smem:[#allocation30_spill]] %s6421_s23  ;;  %p5450_p10 = pnand %p3711_p7, %p450_p8 }
  0x20   : > { %s5289_s25 = smov [#allocation5]   ;;  %s5290_s20 = smov [#allocation8]  }
  0x21   : > { %s6423_s24 = scalar_select %p5450_p10, 1, 0 }
  0x22   : > { %p4723_p11 = pneg %p5450_p10  ;;  %s481_s26 = sshll.u32 %s5289_s25, 4  ;;  %s5456_s26 = int_to_ptr.vmem [resolvable:$true] %s481_s26 }
  0x23   : > { %s508_s21 = sshll.u32 %s5290_s20, 4  ;;  %s5291_s22 = smov [#allocation11]   ;;  %s5464_s21 = int_to_ptr.vmem [resolvable:$true] %s508_s21 }
  0x24   : > { %p5460_p12 = pnand %p6399_p9, %p4723_p11  ;;  %s5466_s29 = sshll.u32 %s5291_s22, 4  ;;  %s536_s29 = int_to_ptr.vmem [resolvable:$true] %s5466_s29 }
  0x25   : > { %s6425_s4 = sld [smem:[#allocation34_spill]] }
  0x26   : > { %p5476_p0 = pneg %p5460_p12 }
  0x2b   : > { %s4981_s27 = scalar_lea.hbm %s6425_s4, 384 }
  0x2c   : > { %p4982_p13 = scmp.ne.s32.totalorder %s6425_s4, %s4981_s27  ;;  %p4988_p3 = scmp.lt.u32.totalorder %s4981_s27, %s6425_s4 }
  0x2e   : > { %p4984_p1 = pnand %p5476_p0, %p4982_p13 }
  0x30   : > { %p4985_p2 = pneg %p4984_p1 }
  0x32   : > { %p4990_p4 = pnand %p4988_p3, %p4985_p2 }
  0x34   : > { %4993 = shalt.err (!%p4990_p4)
}
  0x35   : > { %s4994_s30 = scalar_lea.vmem %s5456_s26, 384  ;;  %p5002_p9 = scmp.lt.s32.totalorder %s5456_s26, %s5456_s26 }
  0x36   : > { %p4995_p7 = scmp.ne.s32.totalorder %s5456_s26, %s4994_s30  ;;  %p5003_p6 = scmp.lt.s32.totalorder %s4994_s30, %s4994_s30 }
  0x38   : > { %p4997_p8 = pnand %p4995_p7, %p5476_p0  ;;  %p5004_p13 = por %p5003_p6, %p5002_p9 }
  0x3a   : > { %p4998_p11 = pneg %p4997_p8 }
  0x3c   : > { %p5005_p1 = pnand %p5004_p13, %p4998_p11 }
  0x3e   : > { %5008 = shalt.err (!%p5005_p1)
}
  0x3f   : > { %s5292_s1 = smov 64   ;;  %s5293_s27 = smov 4  }
  0x40   : > { %4729 = dma.hbm_to_vmem [thread:$0]  (!%p5460_p12), %s6425_s4, 384, %s5456_s26, [#allocation6], %s5292_s1, %s5292_s1, %s5293_s27  }
  0x41   : > { %s6427_s7 = sld [smem:[#allocation35_spill]] }
  0x47   : > { %s5009_s30 = scalar_lea.hbm %s6427_s7, 192 }
  0x48   : > { %p5010_p6 = scmp.ne.s32.totalorder %s6427_s7, %s5009_s30  ;;  %p5016_p3 = scmp.lt.u32.totalorder %s5009_s30, %s6427_s7 }
  0x4a   : > { %p5012_p9 = pnand %p5010_p6, %p5476_p0 }
  0x4c   : > { %p5013_p2 = pneg %p5012_p9 }
  0x4e   : > { %p5018_p4 = pnand %p5016_p3, %p5013_p2 }
  0x50   : > { %5021 = shalt.err (!%p5018_p4)
}
  0x51   : > { %s5022_s26 = scalar_lea.vmem %s5464_s21, 192  ;;  %p5030_p13 = scmp.lt.s32.totalorder %s5464_s21, %s5464_s21 }
  0x52   : > { %p5023_p7 = scmp.ne.s32.totalorder %s5464_s21, %s5022_s26  ;;  %p5031_p1 = scmp.lt.s32.totalorder %s5022_s26, %s5022_s26 }
  0x54   : > { %p5025_p8 = pnand %p5023_p7, %p5476_p0  ;;  %p5032_p6 = por %p5031_p1, %p5030_p13 }
  0x56   : > { %p5026_p11 = pneg %p5025_p8 }
  0x58   : > { %p5033_p9 = pnand %p5032_p6, %p5026_p11 }
  0x5a   : > { %5036 = shalt.err (!%p5033_p9)
}
  0x5b   : > { %4735 = dma.hbm_to_vmem [thread:$0]  (!%p5460_p12), %s6427_s7, 192, %s5464_s21, [#allocation9], %s5292_s1, %s5292_s1, %s5293_s27  }
  0x5c   : > { %s5037_s23 = scalar_lea.hbm %s6381_s10, 192 }
  0x5d   : > { %p5038_p2 = scmp.ne.s32.totalorder %s6381_s10, %s5037_s23  ;;  %p5044_p7 = scmp.lt.u32.totalorder %s5037_s23, %s6381_s10 }
  0x5f   : > { %p5040_p3 = pnand %p5038_p2, %p5476_p0 }
  0x61   : > { %p5041_p4 = pneg %p5040_p3 }
  0x63   : > { %p5046_p8 = pnand %p5044_p7, %p5041_p4 }
  0x65   : > { %5049 = shalt.err (!%p5046_p8)
}
  0x66   : > { %s5050_s26 = scalar_lea.vmem %s536_s29, 192  ;;  %p5058_p6 = scmp.lt.s32.totalorder %s536_s29, %s536_s29 }
  0x67   : > { %p5051_p11 = scmp.ne.s32.totalorder %s536_s29, %s5050_s26  ;;  %p5059_p9 = scmp.lt.s32.totalorder %s5050_s26, %s5050_s26 }
  0x69   : > { %p5053_p13 = pnand %p5051_p11, %p5476_p0  ;;  %p5060_p5 = por %p5059_p9, %p5058_p6 }
  0x6b   : > { %p5054_p1 = pneg %p5053_p13 }
  0x6d   : > { %p5061_p10 = pnand %p5060_p5, %p5054_p1 }
  0x6f   : > { %5064 = shalt.err (!%p5061_p10)
}
  0x70   : > { %4741 = dma.hbm_to_vmem [thread:$0]  (!%p5460_p12), %s6381_s10, 192, %s536_s29, [#allocation12], %s5292_s1, %s5292_s1, %s5293_s27  }
  0x71   : > { %s5294_s17 = smov [#allocation2]   ;;  %s5295_s2 = smov [#allocation7]  }
  0x72   : > { %s462_s28 = sshll.u32 %s5294_s17, 4  ;;  %s498_s23 = sshll.u32 %s5295_s2, 4  ;;  %s463_s28 = int_to_ptr.vmem [resolvable:$true] %s462_s28  ;;  %s499_s23 = int_to_ptr.vmem [resolvable:$true] %s498_s23 }
  0x73   : > { %s6428_s22 = sld [smem:[#allocation32_spill]] }
  0x79   : > { %s5065_s30 = scalar_lea.hbm %s6428_s22, 384 }
  0x7a   : > { %p5066_p5 = scmp.ne.s32.totalorder %s6428_s22, %s5065_s30  ;;  %p5072_p3 = scmp.lt.u32.totalorder %s5065_s30, %s6428_s22 }
  0x7c   : > { %p5068_p10 = pnand %p5066_p5, %p5476_p0 }
  0x7e   : > { %p5069_p2 = pneg %p5068_p10 }
  0x80   : > { %p5074_p4 = pnand %p5072_p3, %p5069_p2 }
  0x82   : > { %5077 = shalt.err (!%p5074_p4)
}
  0x83   : > { %s5078_s29 = scalar_lea.vmem %s463_s28, 384  ;;  %p5086_p13 = scmp.lt.s32.totalorder %s463_s28, %s463_s28 }
  0x84   : > { %p5079_p7 = scmp.ne.s32.totalorder %s463_s28, %s5078_s29  ;;  %p5087_p1 = scmp.lt.s32.totalorder %s5078_s29, %s5078_s29 }
  0x86   : > { %p5081_p8 = pnand %p5079_p7, %p5476_p0  ;;  %p5088_p6 = por %p5087_p1, %p5086_p13 }
  0x88   : > { %p5082_p11 = pneg %p5081_p8 }
  0x8a   : > { %p5089_p9 = pnand %p5088_p6, %p5082_p11 }
  0x8c   : > { %5092 = shalt.err (!%p5089_p9)
}
  0x8d   : > { %4726 = dma.hbm_to_vmem [thread:$0]  (!%p5460_p12), %s6428_s22, 384, %s463_s28, [#allocation3], %s5292_s1, %s5292_s1, %s5293_s27  }
  0x8e   : > { %s5093_s2 = scalar_lea.hbm %s6377_s6, 16 }
  0x8f   : > { %p5094_p5 = scmp.ne.s32.totalorder %s6377_s6, %s5093_s2  ;;  %p5100_p3 = scmp.lt.u32.totalorder %s5093_s2, %s6377_s6 }
  0x91   : > { %p5096_p10 = pnand %p5094_p5, %p5476_p0 }
  0x93   : > { %p5097_p2 = pneg %p5096_p10 }
  0x95   : > { %p5102_p4 = pnand %p5100_p3, %p5097_p2 }
  0x97   : > { %5105 = shalt.err (!%p5102_p4)
}
  0x98   : > { %s5106_s21 = scalar_lea.vmem %s499_s23, 16  ;;  %s5113_s1 = scalar_lea.vmem %s499_s23, 32 }
  0x99   : > { %p5107_p7 = scmp.ne.s32.totalorder %s499_s23, %s5106_s21  ;;  %p5114_p13 = scmp.lt.s32.totalorder %s499_s23, %s499_s23 }
  0x9a   : > { %p5115_p1 = scmp.lt.s32.totalorder %s5113_s1, %s5106_s21 }
  0x9b   : > { %p5109_p8 = pnand %p5107_p7, %p5476_p0 }
  0x9c   : > { %p5116_p6 = por %p5115_p1, %p5114_p13 }
  0x9d   : > { %p5110_p11 = pneg %p5109_p8 }
  0x9f   : > { %p5117_p9 = pnand %p5116_p6, %p5110_p11 }
  0xa1   : > { %5120 = shalt.err (!%p5117_p9)
}
  0xa2   : > { %4732 = dma.hbm_to_vmem [thread:$0]  (!%p5460_p12), %s6377_s6, 16, %s499_s23, [#allocation6]  }
  0xa3   : > { %s5296_s29 = smov [#allocation10]   ;;  %s5297_s7 = smov [#allocation13]  }
  0xa4   : > { %s525_s4 = sshll.u32 %s5296_s29, 4  ;;  %s552_s15 = sshll.u32 %s5297_s7, 4  ;;  %s526_s4 = int_to_ptr.vmem [resolvable:$true] %s525_s4  ;;  %s553_s15 = int_to_ptr.vmem [resolvable:$true] %s552_s15 }
  0xa5   : > { %s5121_s25 = scalar_lea.hbm %s6380_s9, 16 }
  0xa6   : > { %p5122_p5 = scmp.ne.s32.totalorder %s6380_s9, %s5121_s25  ;;  %p5128_p3 = scmp.lt.u32.totalorder %s5121_s25, %s6380_s9 }
  0xa8   : > { %p5124_p10 = pnand %p5122_p5, %p5476_p0 }
  0xaa   : > { %p5125_p2 = pneg %p5124_p10 }
  0xac   : > { %p5130_p4 = pnand %p5128_p3, %p5125_p2 }
  0xae   : > { %5133 = shalt.err (!%p5130_p4)
}
  0xaf   : > { %s5134_s23 = scalar_lea.vmem %s526_s4, 16  ;;  %s5141_s1 = scalar_lea.vmem %s526_s4, 32 }
  0xb0   : > { %p5135_p7 = scmp.ne.s32.totalorder %s526_s4, %s5134_s23  ;;  %p5142_p13 = scmp.lt.s32.totalorder %s526_s4, %s526_s4 }
  0xb1   : > { %p5143_p1 = scmp.lt.s32.totalorder %s5141_s1, %s5134_s23 }
  0xb2   : > { %p5137_p8 = pnand %p5135_p7, %p5476_p0 }
  0xb3   : > { %p5144_p6 = por %p5143_p1, %p5142_p13 }
  0xb4   : > { %p5138_p11 = pneg %p5137_p8 }
  0xb6   : > { %p5145_p9 = pnand %p5144_p6, %p5138_p11 }
  0xb8   : > { %5148 = shalt.err (!%p5145_p9)
}
  0xb9   : > { %4738 = dma.hbm_to_vmem [thread:$0]  (!%p5460_p12), %s6380_s9, 16, %s526_s4, [#allocation9]  }
  0xba   : > { %s5149_s17 = scalar_lea.hbm %s6383_s12, 16 }
  0xbb   : > { %p5150_p5 = scmp.ne.s32.totalorder %s6383_s12, %s5149_s17  ;;  %p5156_p3 = scmp.lt.u32.totalorder %s5149_s17, %s6383_s12 }
  0xbd   : > { %p5152_p10 = pnand %p5150_p5, %p5476_p0 }
  0xbf   : > { %p5153_p2 = pneg %p5152_p10 }
  0xc1   : > { %p5158_p4 = pnand %p5156_p3, %p5153_p2 }
  0xc3   : > { %5161 = shalt.err (!%p5158_p4)
}
  0xc4   : > { %s5162_s26 = scalar_lea.vmem %s553_s15, 16  ;;  %s5169_s4 = scalar_lea.vmem %s553_s15, 32 }
  0xc5   : > { %p5163_p7 = scmp.ne.s32.totalorder %s553_s15, %s5162_s26  ;;  %p5170_p13 = scmp.lt.s32.totalorder %s553_s15, %s553_s15 }
  0xc6   : > { %p5171_p1 = scmp.lt.s32.totalorder %s5169_s4, %s5162_s26 }
  0xc7   : > { %p5165_p8 = pnand %p5163_p7, %p5476_p0 }
  0xc8   : > { %p5172_p6 = por %p5171_p1, %p5170_p13 }
  0xc9   : > { %p5166_p11 = pneg %p5165_p8 }
  0xcb   : > { %p5173_p9 = pnand %p5172_p6, %p5166_p11 }
  0xcd   : > { %5176 = shalt.err (!%p5173_p9)
}
  0xce   : > { %4744 = dma.hbm_to_vmem [thread:$0]  (!%p5460_p12), %s6383_s12, 16, %s553_s15, [#allocation12]  }
  0xcf   : > { %s5298_s1 = smov [#allocation14]   ;;  %s5177_s7 = scalar_lea.hbm %s6384_s13, 96 }
  0xd0   : > { %s562_s27 = sshll.u32 %s5298_s1, 4  ;;  %p5178_p5 = scmp.ne.s32.totalorder %s6384_s13, %s5177_s7  ;;  %s563_s27 = int_to_ptr.vmem [resolvable:$true] %s562_s27 }
  0xd1   : > { %p5184_p3 = scmp.lt.u32.totalorder %s5177_s7, %s6384_s13 }
  0xd2   : > { %p5180_p10 = pnand %p5178_p5, %p5476_p0 }
  0xd4   : > { %p5181_p2 = pneg %p5180_p10 }
  0xd6   : > { %p5186_p4 = pnand %p5184_p3, %p5181_p2 }
  0xd8   : > { %5189 = shalt.err (!%p5186_p4)
}
  0xd9   : > { %s5190_s15 = scalar_lea.vmem %s563_s27, 96  ;;  %p5198_p13 = scmp.lt.s32.totalorder %s563_s27, %s563_s27 }
  0xda   : > { %p5191_p7 = scmp.ne.s32.totalorder %s563_s27, %s5190_s15  ;;  %p5199_p1 = scmp.lt.s32.totalorder %s5190_s15, %s5190_s15 }
  0xdc   : > { %p5193_p8 = pnand %p5191_p7, %p5476_p0  ;;  %p5200_p6 = por %p5199_p1, %p5198_p13 }
  0xde   : > { %p5194_p11 = pneg %p5193_p8 }
  0xe0   : > { %p5201_p9 = pnand %p5200_p6, %p5194_p11 }
  0xe2   : > { %5204 = shalt.err (!%p5201_p9)
}
  0xe3   : > { %s5299_s30 = smov 32   ;;  %s5300_s26 = smov 2  }
  0xe4   : > { %4747 = dma.hbm_to_vmem [thread:$0]  (!%p5460_p12), %s6384_s13, 96, %s563_s27, [#allocation15], %s5299_s30, %s5299_s30, %s5300_s26  }
  0xe5   : > { %p6429_p5 = scmp.ne.s32.totalorder %s6423_s24, 0 }
  0xe6   : > { %p6430_p10 = scmp.eq.s32.totalorder (!%p6429_p5), %s5422_s0, 0 }
  0xe7   : > { %598 = sbr.rel (%p6429_p5) target bundleno = 4100 (0x1004), region = 92 }
  0xee   : > { %5250 = dma.done.wait (%p6430_p10), [#allocation3], 384   ;;  %p6431_p0 = pmov %p6430_p10 }
  0xf0   : > { %5252 = vsyncadd (%p6431_p0), [#allocation3], 4294966912  ;;  %p6432_p2 = pmov %p6431_p0 }
  0xf1   : > { %p6433_p3 = pmov %p6431_p0 }
  0xf2   : > { %5254 = dma.done.wait (%p6432_p2), [#allocation6], 400  }
  0xf3   : > { %5256 = vsyncadd (%p6433_p3), [#allocation6], 4294966896  ;;  %p6434_p4 = pmov %p6431_p0 }
  0xf4   : > { %p6435_p12 = pmov %p6431_p0 }
  0xf5   : > { %5258 = dma.done.wait (%p6434_p4), [#allocation9], 208  }
  0xf6   : > { %5260 = vsyncadd (%p6435_p12), [#allocation9], 4294967088  ;;  %p6436_p7 = pmov %p6431_p0 }
  0xf7   : > { %p6437_p8 = pmov %p6431_p0 }
  0xf8   : > { %5262 = dma.done.wait (%p6436_p7), [#allocation12], 208  }
  0xf9   : > { %5264 = vsyncadd (%p6437_p8), [#allocation12], 4294967088  ;;  %p6438_p11 = pmov %p6431_p0 }
  0xfa   : > { %p6439_p13 = pmov %p6431_p0 }
  0xfb   : > { %5266 = dma.done.wait (%p6438_p11), [#allocation15], 96  }
  0xfc   : > { %5268 = vsyncadd (%p6439_p13), [#allocation15], 4294967200  ;;  %p679_p1 = scmp.lt.s32.totalorder %s5422_s0, 1  ;;  %v5301_v0 = vmov 0.0   ;;  %vm5302_vm0 = vmmov 0   ;;  %s6440_s1 = sld [smem:[#allocation31_spill]] }
  0xfd   : > { %4257 = vmatprep.subr.bf16.mxu0 %v5301_v0  ;;  %4265 = vmatprep.subr.bf16.mxu1 %v5301_v0  ;;  %v4817_v7 = vld [vmem:[#allocation2] sm:$0xff]   ;;  %v4818_v8 = vld [vmem:[#allocation2 + $0x8] sm:$0xff]   ;;  %s6441_s7 = sld [smem:[#allocation33_spill]]  ;;  %vm698_vm1 = vcmask 261120   ;;  %vm858_vm2 = vcmask 785408   ;;  %v4831_v33 = vld [vmem:[#allocation2 + $0x10] sm:$0xff]  }
  0xfe   : > { %s680_s18 = scalar_select %p679_p1, %s5422_s0, 1  ;;  %4261 = vmatprep.mubr.msk.bf16.mxu0 %vm5302_vm0, %v5301_v0  ;;  %4269 = vmatprep.mubr.msk.bf16.mxu1 %vm5302_vm0, %v5301_v0  ;;  %v4840_v53 = vld [vmem:[%s6376_s5] sm:$0xff]   ;;  %v4841_v54 = vld [vmem:[%s6376_s5 + $0x8] sm:$0xff]   ;;  %v4843_v55 = vld [vmem:[%s6376_s5 + $0x10] sm:$0xff]   ;;  %vm1202_vm5 = vcmask 130048   ;;  %vm2230_vm9 = vcmask 1043456  }
  0xff   : > { %v4845_v56 = vld [vmem:[%s6376_s5 + $0x18] sm:$0xff]   ;;  %v4847_v57 = vld [vmem:[%s6376_s5 + $0x20] sm:$0xff]   ;;  %v4849_v58 = vld [vmem:[%s6376_s5 + $0x28] sm:$0xff]   ;;  %vm2226_vm10 = vcmask 64512   ;;  %s6442_s21 = sld [smem:[#allocation36_spill]]  ;;  %vm3242_vm13 = vcmask 523264  }
 0x100   : > { %s4074_s24 = sshll.u32 %s680_s18, 5  ;;  %v4851_v59 = vld [vmem:[%s6376_s5 + $0x30] sm:$0xff]   ;;  %v3783_v61 = vld [vmem:[%s6374_s3] ss:$0 sm:$0xff]  ;;  %s6444_s19 = sld [smem:[#allocation37_spill]]  ;;  %vm3561_vm14 = vcmask 253952  }
 0x101   : > { %s6446_s25 = sld [smem:[#allocation38_spill]] }
 0x102   : > { %s683_s27 = scalar_lea.vmem %s6440_s1, %s4074_s24  ;;  %s6445_s1 = sld [smem:[#allocation29_spill]] }
 0x103   : > { %v685_v1 = vld [vmem:[%s683_s27] sm:$0xff]  ;;  %v686_v2 = vld [vmem:[%s683_s27 + $0x8] sm:$0xff]  ;;  %v687_v3 = vld [vmem:[%s683_s27 + $0x10] sm:$0xff] }
 0x104   : > { %v5674_v4 = vpack.c.bf16 %v686_v2, %v685_v1  ;;  %v688_v5 = vld [vmem:[%s683_s27 + $0x18] sm:$0xff]  ;;  %v4819_v9 = vld [vmem:[%s6441_s7 + $0x30] sm:$0xff]   ;;  %v4820_v10 = vld [vmem:[%s6441_s7] sm:$0xff]   ;;  %s4071_s27 = sshll.u32 %s5422_s0, 4  ;;  %s5305_s0 = smov [#allocation16]  }
 0x105   : > { %v5678_v6 = vpack.c.bf16 %v688_v5, %v687_v3  ;;  %v4821_v11 = vld [vmem:[%s6441_s7 + $0x38] sm:$0xff]   ;;  %v4822_v12 = vld [vmem:[%s6441_s7 + $0x8] sm:$0xff]   ;;  %v4823_v13 = vld [vmem:[%s6441_s7 + $0x40] sm:$0xff]   ;;  %s5209_s26 = sshll.u32 %s5305_s0, 4  ;;  %s5210_s26 = int_to_ptr.vmem [resolvable:$false] %s5209_s26 }
 0x106   : > { %4258 = vmatpush3.bf16.msra.mxu0 %v5674_v4  ;;  %4266 = vmatpush3.bf16.msra.mxu1 %v5674_v4  ;;  %v4824_v14 = vld [vmem:[%s6441_s7 + $0x10] sm:$0xff]   ;;  %v4825_v15 = vld [vmem:[%s6441_s7 + $0x48] sm:$0xff]   ;;  %v4826_v16 = vld [vmem:[%s6441_s7 + $0x18] sm:$0xff]   ;;  %s5211_s4 = scalar_lea.vmem %s5210_s26, 32 }
 0x107   : > { %4259 = vmatprep.subr.bf16.mxu0 %v5301_v0  ;;  %4267 = vmatprep.subr.bf16.mxu1 %v5301_v0  ;;  %v4827_v17 = vld [vmem:[%s6441_s7 + $0x50] sm:$0xff]   ;;  %v4828_v18 = vld [vmem:[%s6441_s7 + $0x20] sm:$0xff]   ;;  %v4829_v19 = vld [vmem:[%s6441_s7 + $0x58] sm:$0xff]   ;;  %s6329_s20 = scalar_lea.hbm %s6446_s25, %s4071_s27 }
 0x108   : > { %v4830_v20 = vld [vmem:[%s6441_s7 + $0x28] sm:$0xff]   ;;  %v4832_v31 = vld [vmem:[%s6441_s7 + $0x60] sm:$0xff]   ;;  %v4834_v34 = vld [vmem:[%s6441_s7 + $0x70] sm:$0xff]   ;;  %p6447_p9 = scmp.ne.s32.totalorder %s6445_s1, 0 }
 0x109   : > { %v4833_v32 = vld [vmem:[%s6441_s7 + $0x68] sm:$0xff]   ;;  %v4835_v35 = vld [vmem:[%s6441_s7 + $0x78] sm:$0xff]   ;;  %v4836_v36 = vld [vmem:[%s6441_s7 + $0x80] sm:$0xff]  }
 0x10a   : > { %4260 = vmatpush3.bf16.msra.mxu0 %v5678_v6  ;;  %4268 = vmatpush3.bf16.msra.mxu1 %v5678_v6  ;;  %v4837_v37 = vld [vmem:[%s6441_s7 + $0x88] sm:$0xff]  }
 0x10b   : > { %4273 = vmatprep.subr.bf16.mxu0 %v5301_v0  ;;  %4289 = vmatprep.subr.bf16.mxu1 %v5301_v0 }
 0x10d   : > { %4262 = vmatmul.mubr.msk.bf16.vlgmr.msra.gmra.mrb[0].mxu0 %vm698_vm1, %v4817_v7  ;;  %4270 = vmatmul.mubr.msk.bf16.vlgmr.msra.gmra.mrb[0].mxu1 %vm698_vm1, %v4818_v8 }
 0x10e   : > { %4274 = vmatpush3.bf16.msra.mxu0 %v4819_v9  ;;  %4290 = vmatpush3.bf16.msra.mxu1 %v4820_v10 }
 0x10f   : > { %4275 = vmatprep.subr.bf16.mxu0 %v5301_v0  ;;  %4291 = vmatprep.subr.bf16.mxu1 %v5301_v0 }
 0x110   : > { %4285 = vmatprep.mubr.msk.bf16.mxu0 %vm5302_vm0, %v5301_v0  ;;  %4301 = vmatprep.mubr.msk.bf16.mxu1 %vm5302_vm0, %v5301_v0 }
 0x112   : > { %4276 = vmatpush3.bf16.msra.mxu0 %v4821_v11  ;;  %4292 = vmatpush3.bf16.msra.mxu1 %v4822_v12 }
 0x113   : > { %4277 = vmatprep.subr.bf16.mxu0 %v5301_v0  ;;  %4293 = vmatprep.subr.bf16.mxu1 %v5301_v0 }
 0x116   : > { %4278 = vmatpush3.bf16.msra.mxu0 %v4823_v13  ;;  %4294 = vmatpush3.bf16.msra.mxu1 %v4824_v14 }
 0x117   : > { %4279 = vmatprep.subr.bf16.mxu0 %v5301_v0  ;;  %4295 = vmatprep.subr.bf16.mxu1 %v5301_v0 }
 0x11a   : > { %4280 = vmatpush3.bf16.msra.mxu0 %v4825_v15  ;;  %4296 = vmatpush3.bf16.msra.mxu1 %v4826_v16 }
 0x11b   : > { %4281 = vmatprep.subr.bf16.mxu0 %v5301_v0  ;;  %4297 = vmatprep.subr.bf16.mxu1 %v5301_v0 }
 0x11e   : > { %4282 = vmatpush3.bf16.msra.mxu0 %v4827_v17  ;;  %4298 = vmatpush3.bf16.msra.mxu1 %v4828_v18 }
 0x11f   : > { %4283 = vmatprep.subr.bf16.mxu0 %v5301_v0  ;;  %4299 = vmatprep.subr.bf16.mxu1 %v5301_v0 }
 0x122   : > { %4284 = vmatpush3.bf16.msra.mxu0 %v4829_v19  ;;  %4300 = vmatpush3.bf16.msra.mxu1 %v4830_v20 }
 0x123   : > { %4305 = vmatprep.subr.bf16.mxu0 %v5301_v0  ;;  %4313 = vmatprep.subr.bf16.mxu1 %v5301_v0 }
 0x1e0   : > { %v736_v21 = vpop.f32.mrb[0].mxu0  ;;  %v801_v22 = vpop.f32.mrb[0].mxu1 }
 0x1e1   : > { %v4263_v23 = vpop.f32.mrb[1].mxu0  ;;  %v4271_v24 = vpop.f32.mrb[1].mxu1 }
 0x1e2   : > { %v739_v25 = vpop.f32.mrb[2].mxu0  ;;  %v804_v26 = vpop.f32.mrb[2].mxu1 }
 0x1e3   : > { %v743_v27 = vpack.c.bf16 %v739_v25, %v736_v21  ;;  %v808_v28 = vpack.c.bf16 %v804_v26, %v801_v22  ;;  %v4272_v29 = vpop.f32.mrb[3].mxu1  ;;  %v4264_v30 = vpop.f32.mrb[3].mxu0 }
 0x1e5   : > { %4286 = vmatmul.mubr.msk.bf16.vlgmr.msra.gmra.mrb[4].mxu0 %vm858_vm2, %v808_v28  ;;  %4302 = vmatmul.mubr.msk.bf16.vlgmr.msra.gmra.mrb[4].mxu1 %vm858_vm2, %v743_v27 }
 0x1e6   : > { %4306 = vmatpush3.bf16.msra.mxu0 %v5674_v4  ;;  %4309 = vmatprep.mubr.msk.bf16.mxu0 %vm5302_vm0, %v5301_v0 }
 0x1e7   : > { %4307 = vmatprep.subr.bf16.mxu0 %v5301_v0  ;;  %4314 = vmatpush3.bf16.msra.mxu1 %v4832_v31 }
 0x1e8   : > { %4315 = vmatprep.subr.bf16.mxu1 %v5301_v0  ;;  %4325 = vmatprep.mubr.msk.bf16.mxu1 %vm5302_vm0, %v5301_v0 }
 0x1ea   : > { %4308 = vmatpush3.bf16.msra.mxu0 %v5678_v6 }
 0x1eb   : > { %4316 = vmatpush3.bf16.msra.mxu1 %v4833_v32  ;;  %4329 = vmatprep.subr.bf16.mxu0 %v5301_v0 }
 0x1ec   : > { %4317 = vmatprep.subr.bf16.mxu1 %v5301_v0 }
 0x1ed   : > { %4310 = vmatmul.mubr.msk.bf16.vlgmr.msra.gmra.mrb[8].mxu0 %vm698_vm1, %v4831_v33 }
 0x1ee   : > { %4331 = vmatprep.mubr.msk.bf16.mxu0 %vm5302_vm0, %v5301_v0 }
 0x1ef   : > { %4318 = vmatpush3.bf16.msra.mxu1 %v4834_v34 }
 0x1f0   : > { %4319 = vmatprep.subr.bf16.mxu1 %v5301_v0 }
 0x1f3   : > { %4320 = vmatpush3.bf16.msra.mxu1 %v4835_v35 }
 0x1f4   : > { %4321 = vmatprep.subr.bf16.mxu1 %v5301_v0 }
 0x1f7   : > { %4322 = vmatpush3.bf16.msra.mxu1 %v4836_v36 }
 0x1f8   : > { %4323 = vmatprep.subr.bf16.mxu1 %v5301_v0 }
 0x1fb   : > { %4324 = vmatpush3.bf16.msra.mxu1 %v4837_v37 }
 0x1fc   : > { %4361 = vmatprep.subr.bf16.mxu1 %v5301_v0 }
 0x2b8   : > { %v896_v38 = vpop.f32.mrb[4].mxu0  ;;  %v976_v39 = vpop.f32.mrb[4].mxu1 }
 0x2b9   : > { %v977_v40 = vadd.f32 %v976_v39, %v896_v38  ;;  %v4287_v41 = vpop.f32.mrb[5].mxu0  ;;  %v4303_v42 = vpop.f32.mrb[5].mxu1 }
 0x2ba   : > { %v899_v43 = vpop.f32.mrb[6].mxu0  ;;  %v979_v44 = vpop.f32.mrb[6].mxu1 }
 0x2bb   : > { %v980_v45 = vadd.f32 %v979_v44, %v899_v43  ;;  %v4288_v46 = vpop.f32.mrb[7].mxu0  ;;  %v4304_v47 = vpop.f32.mrb[7].mxu1  ;;  %v5303_v44 = vmov 1.0  }
 0x2c0   : > { %v1028_v48 = vpop.f32.mrb[8].mxu0 }
 0x2c1   : > { %v4311_v49 = vpop.f32.mrb[9].mxu0 }
 0x2c2   : > { %v1031_v50 = vpop.f32.mrb[10].mxu0 }
 0x2c3   : > { %v1035_v51 = vpack.c.bf16 %v1031_v50, %v1028_v48  ;;  %v4312_v52 = vpop.f32.mrb[11].mxu0 }
 0x2c5   : > { %4326 = vmatmul.mubr.msk.bf16.vlgmr.msra.gmra.mrb[8].mxu1 %vm858_vm2, %v1035_v51 }
 0x2c6   : > { %4377 = vmatprep.mubr.msk.bf16.mxu1 %vm5302_vm0, %v5301_v0  ;;  %4362 = vmatpush3.bf16.msra.mxu1 %v4840_v53 }
 0x2c7   : > { %4363 = vmatprep.subr.bf16.mxu1 %v5301_v0 }
 0x2ca   : > { %4364 = vmatpush3.bf16.msra.mxu1 %v4841_v54 }
 0x2cb   : > { %4365 = vmatprep.subr.bf16.mxu1 %v5301_v0 }
 0x2ce   : > { %4366 = vmatpush3.bf16.msra.mxu1 %v4843_v55 }
 0x2cf   : > { %4367 = vmatprep.subr.bf16.mxu1 %v5301_v0 }
 0x2d2   : > { %4368 = vmatpush3.bf16.msra.mxu1 %v4845_v56 }
 0x2d3   : > { %4369 = vmatprep.subr.bf16.mxu1 %v5301_v0 }
 0x2d6   : > { %4370 = vmatpush3.bf16.msra.mxu1 %v4847_v57 }
 0x2d7   : > { %4371 = vmatprep.subr.bf16.mxu1 %v5301_v0 }
 0x2da   : > { %4372 = vmatpush3.bf16.msra.mxu1 %v4849_v58  ;;  %v4838_v58 = vld [vmem:[#allocation5] sm:$0xff]  }
 0x2db   : > { %4373 = vmatprep.subr.bf16.mxu1 %v5301_v0 }
 0x2de   : > { %4374 = vmatpush3.bf16.msra.mxu1 %v4851_v59  ;;  %v4839_v59 = vld [vmem:[#allocation5 + $0x8] sm:$0xff]  }
 0x2df   : > { %4375 = vmatprep.subr.bf16.mxu1 %v5301_v0 }
 0x398   : > { %v1122_v60 = vpop.f32.mrb[8].mxu1 }
 0x399   : > { %v1129_v62 = vadd.f32 %v1122_v60, %v977_v40  ;;  %v4327_v63 = vpop.f32.mrb[9].mxu1  ;;  %v4842_v60 = vld [vmem:[%s6376_s5 + $0x40] sm:$0xff]  }
 0x39a   : > { %v1125_v1 = vpop.f32.mrb[10].mxu1  ;;  %v4848_v63 = vld [vmem:[%s6376_s5 + $0x58] sm:$0xff]  }
 0x39b   : > { %v1138_v2 = vadd.f32 %v3783_v61, %v1129_v62  ;;  %v1130_v3 = vadd.f32 %v1125_v1, %v980_v45  ;;  %v4328_v4 = vpop.f32.mrb[11].mxu1  ;;  %v4846_v62 = vld [vmem:[%s6376_s5 + $0x50] sm:$0xff]   ;;  %v4850_v1 = vld [vmem:[%s6376_s5 + $0x60] sm:$0xff]  }
 0x39c   : > { %v4854_v4 = vld [vmem:[%s6376_s5 + $0x70] sm:$0xff]  }
 0x39d   : > { %v1140_v5 = vmul.f32 0.70710677, %v1138_v2  ;;  %v1139_v6 = vadd.f32 %v3783_v61, %v1130_v3  ;;  %v1188_v52 = vmul.f32 0.5, %v1138_v2  ;;  %v4844_v61 = vld [vmem:[%s6376_s5 + $0x48] sm:$0xff]   ;;  %v4853_v3 = vld [vmem:[%s6376_s5 + $0x38] sm:$0xff]  }
 0x39e   : > { %v4852_v2 = vld [vmem:[%s6376_s5 + $0x68] sm:$0xff]   ;;  %4376 = vmatpush3.bf16.msra.mxu1 %v4853_v3 }
 0x39f   : > { %v1146_v7 = vand.u32 2147483647, %v1140_v5  ;;  %v1141_v8 = vmul.f32 0.70710677, %v1139_v6  ;;  %vm1142_vm3 = vcmp.lt.f32.partialorder %v1140_v5, 0.0  ;;  %v1189_v53 = vmul.f32 0.5, %v1139_v6  ;;  %4387 = vmatprep.subr.bf16.mxu1 %v5301_v0 }
 0x3a0   : > { %v1144_v45 = vsel %vm1142_vm3, -1.0, %v5303_v44  ;;  %v4855_v5 = vld [vmem:[%s6376_s5 + $0x78] sm:$0xff]  }
 0x3a1   : > { %v1148_v9 = vmul.f32 0.3275911, %v1146_v7  ;;  %v1147_v10 = vand.u32 2147483647, %v1141_v8  ;;  %v1174_v14 = vsub.f32 0.0, %v1146_v7  ;;  %vm1143_vm4 = vcmp.lt.f32.partialorder %v1141_v8, 0.0 }
 0x3a2   : > { %v1145_v49 = vsel %vm1143_vm4, -1.0, %v5303_v44 }
 0x3a3   : > { %v1150_v11 = vadd.f32 1.0, %v1148_v9  ;;  %v1149_v12 = vmul.f32 0.3275911, %v1147_v10  ;;  %v1175_v15 = vsub.f32 0.0, %v1147_v10  ;;  %v1176_v17 = vmul.f32 %v1174_v14, %v1146_v7  ;;  %v4857_v9 = vld [vmem:[%s6376_s5 + $0x80] sm:$0xff]  }
 0x3a5   : > { %4953 = vrcp.f32 %v1150_v11  ;;  %v1151_v13 = vadd.f32 1.0, %v1149_v12  ;;  %v1177_v21 = vmul.f32 %v1175_v15, %v1147_v10  ;;  %v1178_v22 = vmul.f32 1.442695, %v1176_v17  ;;  %v4858_v12 = vld [vmem:[%s6376_s5 + $0x88] sm:$0xff]  }
 0x3a7   : > { %4955 = vrcp.f32 %v1151_v13  ;;  %v1180_v27 = vmul.f32 1.442695, %v1177_v21  ;;  %v4861_v21 = vld [vmem:[%s6376_s5 + $0xa0] sm:$0xff]  }
 0x3a8   : > { %4957 = vpow2.f32 %v1178_v22  ;;  %v4862_v22 = vld [vmem:[%s6376_s5 + $0xa8] sm:$0xff]  }
 0x3a9   : > { %4959 = vpow2.f32 %v1180_v27 }
 0x3af   : > { %v4954_v16 = vpop.eup %4953 }
 0x3b0   : > { %v1156_v18 = vmul.f32 1.0614054, %v4954_v16 }
 0x3b1   : > { %v4956_v19 = vpop.eup %4955 }
 0x3b2   : > { %v1158_v20 = vadd.f32 -1.4531521, %v1156_v18  ;;  %v1157_v23 = vmul.f32 1.0614054, %v4956_v19  ;;  %v4958_v38 = vpop.eup %4957  ;;  %v4859_v18 = vld [vmem:[%s6376_s5 + $0x90] sm:$0xff]  }
 0x3b3   : > { %v4960_v42 = vpop.eup %4959 }
 0x3b4   : > { %v1160_v24 = vmul.f32 %v4954_v16, %v1158_v20  ;;  %v1159_v25 = vadd.f32 -1.4531521, %v1157_v23  ;;  %v4860_v20 = vld [vmem:[%s6376_s5 + $0x98] sm:$0xff]   ;;  %v4863_v23 = vld [vmem:[%s6376_s5 + $0xb0] sm:$0xff]  }
 0x3b6   : > { %v1162_v26 = vadd.f32 1.4214138, %v1160_v24  ;;  %v1161_v28 = vmul.f32 %v4956_v19, %v1159_v25  ;;  %v4864_v24 = vld [vmem:[%s6376_s5 + $0xb8] sm:$0xff]  }
 0x3b8   : > { %v1164_v29 = vmul.f32 %v4954_v16, %v1162_v26  ;;  %v1163_v30 = vadd.f32 1.4214138, %v1161_v28 }
 0x3ba   : > { %v1166_v31 = vadd.f32 -0.28449672, %v1164_v29  ;;  %v1165_v32 = vmul.f32 %v4956_v19, %v1163_v30 }
 0x3bc   : > { %v1168_v33 = vmul.f32 %v4954_v16, %v1166_v31  ;;  %v1167_v34 = vadd.f32 -0.28449672, %v1165_v32 }
 0x3be   : > { %v1170_v35 = vadd.f32 0.2548296, %v1168_v33  ;;  %v1169_v36 = vmul.f32 %v4956_v19, %v1167_v34 }
 0x3c0   : > { %v1172_v37 = vmul.f32 %v4954_v16, %v1170_v35  ;;  %v1171_v39 = vadd.f32 0.2548296, %v1169_v36 }
 0x3c2   : > { %v1182_v40 = vmul.f32 %v4958_v38, %v1172_v37  ;;  %v1173_v41 = vmul.f32 %v4956_v19, %v1171_v39  ;;  %v4856_v19 = vld [vmem:[#allocation5 + $0x10] sm:$0xff]  }
 0x3c4   : > { %v1184_v43 = vsub.f32 1.0, %v1182_v40  ;;  %v1183_v46 = vmul.f32 %v4960_v42, %v1173_v41  ;;  %v4865_v40 = vld [vmem:[%s6379_s8] sm:$0xff]   ;;  %v4866_v41 = vld [vmem:[%s6379_s8 + $0x8] sm:$0xff]   ;;  %v4868_v42 = vld [vmem:[%s6379_s8 + $0x10] sm:$0xff]  }
 0x3c6   : > { %v1186_v47 = vmul.f32 %v1184_v43, %v1144_v45  ;;  %v1185_v48 = vsub.f32 1.0, %v1183_v46  ;;  %v4870_v43 = vld [vmem:[%s6379_s8 + $0x18] sm:$0xff]   ;;  %v4872_v45 = vld [vmem:[%s6379_s8 + $0x20] sm:$0xff]   ;;  %v4874_v46 = vld [vmem:[%s6379_s8 + $0x28] sm:$0xff]  }
 0x3c8   : > { %v1190_v50 = vadd.f32 1.0, %v1186_v47  ;;  %v1187_v51 = vmul.f32 %v1185_v48, %v1145_v49  ;;  %v4876_v47 = vld [vmem:[%s6379_s8 + $0x30] sm:$0xff]  }
 0x3c9   : > { %v3846_v49 = vld [vmem:[#allocation7] ss:$0 sm:$0xff] }
 0x3ca   : > { %v1191_v54 = vadd.f32 1.0, %v1187_v51  ;;  %v1192_v55 = vmul.f32 %v1190_v50, %v1188_v52 }
 0x3cc   : > { %v1193_v56 = vmul.f32 %v1191_v54, %v1189_v53 }
 0x3ce   : > { %v1194_v57 = vpack.c.bf16 %v1193_v56, %v1192_v55 }
 0x3d0   : > { %4330 = vmatpush3.bf16.msra.mxu0 %v1194_v57 }
 0x3d1   : > { %4335 = vmatprep.subr.bf16.mxu0 %v5301_v0 }
 0x3d3   : > { %4332 = vmatmul.mubr.msk.bf16.vlgmr.msra.gmra.mrb[12].mxu0 %vm1202_vm5, %v4838_v58 }
 0x3d4   : > { %4336 = vmatpush3.bf16.msra.mxu0 %v1194_v57  ;;  %4337 = vmatprep.mubr.msk.bf16.mxu0 %vm5302_vm0, %v5301_v0 }
 0x3d5   : > { %4341 = vmatprep.subr.bf16.mxu0 %v5301_v0 }
 0x3db   : > { %4338 = vmatmul.mubr.msk.bf16.vlgmr.msra.gmra.mrb[16].mxu0 %vm1202_vm5, %v4839_v59 }
 0x3dc   : > { %4342 = vmatpush3.bf16.msra.mxu0 %v4842_v60  ;;  %4357 = vmatprep.mubr.msk.bf16.mxu0 %vm5302_vm0, %v5301_v0 }
 0x3dd   : > { %4343 = vmatprep.subr.bf16.mxu0 %v5301_v0 }
 0x3e0   : > { %4344 = vmatpush3.bf16.msra.mxu0 %v4844_v61 }
 0x3e1   : > { %4345 = vmatprep.subr.bf16.mxu0 %v5301_v0 }
 0x3e4   : > { %4346 = vmatpush3.bf16.msra.mxu0 %v4846_v62 }
 0x3e5   : > { %4347 = vmatprep.subr.bf16.mxu0 %v5301_v0 }
 0x3e8   : > { %4348 = vmatpush3.bf16.msra.mxu0 %v4848_v63 }
 0x3e9   : > { %4349 = vmatprep.subr.bf16.mxu0 %v5301_v0 }
 0x3ec   : > { %4350 = vmatpush3.bf16.msra.mxu0 %v4850_v1 }
 0x3ed   : > { %4351 = vmatprep.subr.bf16.mxu0 %v5301_v0 }
 0x3f0   : > { %4352 = vmatpush3.bf16.msra.mxu0 %v4852_v2 }
 0x3f1   : > { %4353 = vmatprep.subr.bf16.mxu0 %v5301_v0 }
 0x3f4   : > { %4354 = vmatpush3.bf16.msra.mxu0 %v4854_v4 }
 0x3f5   : > { %4355 = vmatprep.subr.bf16.mxu0 %v5301_v0 }
 0x3f8   : > { %4356 = vmatpush3.bf16.msra.mxu0 %v4855_v5 }
 0x3f9   : > { %4381 = vmatprep.subr.bf16.mxu0 %v5301_v0 }
 0x4a6   : > { %v1240_v6 = vpop.f32.mrb[12].mxu0 }
 0x4a7   : > { %v4333_v7 = vpop.f32.mrb[13].mxu0 }
 0x4a8   : > { %v1243_v8 = vpop.f32.mrb[14].mxu0 }
 0x4a9   : > { %v1247_v10 = vpack.c.bf16 %v1243_v8, %v1240_v6  ;;  %v4334_v11 = vpop.f32.mrb[15].mxu0 }
 0x4ab   : > { %4378 = vmatmul.mubr.bf16.vlgmr.msra.gmra.mrb[12].mxu1 %v1247_v10 }
 0x4ac   : > { %4388 = vmatpush3.bf16.msra.mxu1 %v4857_v9  ;;  %4403 = vmatprep.mubr.msk.bf16.mxu1 %vm5302_vm0, %v5301_v0 }
 0x4ad   : > { %4389 = vmatprep.subr.bf16.mxu1 %v5301_v0 }
 0x4ae   : > { %v1309_v13 = vpop.f32.mrb[16].mxu0 }
 0x4af   : > { %v4339_v14 = vpop.f32.mrb[17].mxu0 }
 0x4b0   : > { %v1312_v15 = vpop.f32.mrb[18].mxu0  ;;  %4390 = vmatpush3.bf16.msra.mxu1 %v4858_v12 }
 0x4b1   : > { %v1316_v16 = vpack.c.bf16 %v1312_v15, %v1309_v13  ;;  %v4340_v17 = vpop.f32.mrb[19].mxu0  ;;  %4391 = vmatprep.subr.bf16.mxu1 %v5301_v0 }
 0x4b3   : > { %4358 = vmatmul.mubr.bf16.vlgmr.msra.gmra.mrb[20].mxu0 %v1316_v16 }
 0x4b4   : > { %4382 = vmatpush3.bf16.msra.mxu0 %v1194_v57  ;;  %4383 = vmatprep.mubr.msk.bf16.mxu0 %vm5302_vm0, %v5301_v0 }
 0x4b5   : > { %4392 = vmatpush3.bf16.msra.mxu1 %v4859_v18  ;;  %4407 = vmatprep.subr.bf16.mxu0 %v5301_v0 }
 0x4b6   : > { %4393 = vmatprep.subr.bf16.mxu1 %v5301_v0 }
 0x4b9   : > { %4394 = vmatpush3.bf16.msra.mxu1 %v4860_v20 }
 0x4ba   : > { %4395 = vmatprep.subr.bf16.mxu1 %v5301_v0 }
 0x4bb   : > { %4384 = vmatmul.mubr.msk.bf16.vlgmr.msra.gmra.mrb[24].mxu0 %vm1202_vm5, %v4856_v19 }
 0x4bc   : > { %4409 = vmatprep.mubr.msk.bf16.mxu0 %vm5302_vm0, %v5301_v0 }
 0x4bd   : > { %4396 = vmatpush3.bf16.msra.mxu1 %v4861_v21 }
 0x4be   : > { %4397 = vmatprep.subr.bf16.mxu1 %v5301_v0 }
 0x4c1   : > { %4398 = vmatpush3.bf16.msra.mxu1 %v4862_v22 }
 0x4c2   : > { %4399 = vmatprep.subr.bf16.mxu1 %v5301_v0 }
 0x4c5   : > { %4400 = vmatpush3.bf16.msra.mxu1 %v4863_v23 }
 0x4c6   : > { %4401 = vmatprep.subr.bf16.mxu1 %v5301_v0 }
 0x4c9   : > { %4402 = vmatpush3.bf16.msra.mxu1 %v4864_v24 }
 0x4ca   : > { %4439 = vmatprep.subr.bf16.mxu1 %v5301_v0 }
 0x57e   : > { %v1505_v25 = vpop.f32.mrb[12].mxu1 }
 0x57f   : > { %v4379_v26 = vpop.f32.mrb[13].mxu1 }
 0x580   : > { %v1508_v27 = vpop.f32.mrb[14].mxu1 }
 0x581   : > { %v4380_v28 = vpop.f32.mrb[15].mxu1 }
 0x586   : > { %v1416_v29 = vpop.f32.mrb[20].mxu0 }
 0x587   : > { %v1506_v30 = vadd.f32 %v1505_v25, %v1416_v29  ;;  %v4359_v31 = vpop.f32.mrb[21].mxu0 }
 0x588   : > { %v1419_v32 = vpop.f32.mrb[22].mxu0 }
 0x589   : > { %v1509_v33 = vadd.f32 %v1508_v27, %v1419_v32  ;;  %v4360_v34 = vpop.f32.mrb[23].mxu0 }
 0x58e   : > { %v1557_v35 = vpop.f32.mrb[24].mxu0 }
 0x58f   : > { %v4385_v36 = vpop.f32.mrb[25].mxu0 }
 0x590   : > { %v1560_v37 = vpop.f32.mrb[26].mxu0 }
 0x591   : > { %v1564_v38 = vpack.c.bf16 %v1560_v37, %v1557_v35  ;;  %v4386_v39 = vpop.f32.mrb[27].mxu0 }
 0x593   : > { %4404 = vmatmul.mubr.bf16.vlgmr.msra.gmra.mrb[16].mxu1 %v1564_v38 }
 0x594   : > { %4455 = vmatprep.mubr.msk.bf16.mxu1 %vm5302_vm0, %v5301_v0  ;;  %4440 = vmatpush3.bf16.msra.mxu1 %v4865_v40 }
 0x595   : > { %4441 = vmatprep.subr.bf16.mxu1 %v5301_v0 }
 0x598   : > { %4442 = vmatpush3.bf16.msra.mxu1 %v4866_v41 }
 0x599   : > { %4443 = vmatprep.subr.bf16.mxu1 %v5301_v0 }
 0x59c   : > { %4444 = vmatpush3.bf16.msra.mxu1 %v4868_v42 }
 0x59d   : > { %4445 = vmatprep.subr.bf16.mxu1 %v5301_v0 }
 0x5a0   : > { %4446 = vmatpush3.bf16.msra.mxu1 %v4870_v43 }
 0x5a1   : > { %4447 = vmatprep.subr.bf16.mxu1 %v5301_v0 }
 0x5a4   : > { %4448 = vmatpush3.bf16.msra.mxu1 %v4872_v45 }
 0x5a5   : > { %4449 = vmatprep.subr.bf16.mxu1 %v5301_v0 }
 0x5a8   : > { %4450 = vmatpush3.bf16.msra.mxu1 %v4874_v46  ;;  %v1737_v46 = vld [vmem:[#allocation8] sm:$0xf] }
 0x5a9   : > { %4451 = vmatprep.subr.bf16.mxu1 %v5301_v0 }
 0x5ac   : > { %4452 = vmatpush3.bf16.msra.mxu1 %v4876_v47  ;;  %v1799_v47 = vld [vmem:[#allocation8 + $0x4] sm:$0xf] }
 0x5ad   : > { %4453 = vmatprep.subr.bf16.mxu1 %v5301_v0 }
 0x666   : > { %v1664_v48 = vpop.f32.mrb[16].mxu1 }
 0x667   : > { %v1671_v50 = vadd.f32 %v1664_v48, %v1506_v30  ;;  %v4405_v51 = vpop.f32.mrb[17].mxu1  ;;  %v4867_v48 = vld [vmem:[%s6379_s8 + $0x40] sm:$0xff]  }
 0x668   : > { %v1667_v52 = vpop.f32.mrb[18].mxu1  ;;  %v4873_v51 = vld [vmem:[%s6379_s8 + $0x58] sm:$0xff]  }
 0x669   : > { %v1680_v53 = vadd.f32 %v3846_v49, %v1671_v50  ;;  %v1672_v54 = vadd.f32 %v1667_v52, %v1509_v33  ;;  %v4406_v55 = vpop.f32.mrb[19].mxu1  ;;  %v4871_v50 = vld [vmem:[%s6379_s8 + $0x50] sm:$0xff]   ;;  %v4875_v52 = vld [vmem:[%s6379_s8 + $0x60] sm:$0xff]  }
 0x66a   : > { %v4879_v55 = vld [vmem:[%s6379_s8 + $0x70] sm:$0xff]  }
 0x66b   : > { %v1682_v56 = vmul.f32 0.70710677, %v1680_v53  ;;  %v1681_v57 = vadd.f32 %v3846_v49, %v1672_v54  ;;  %v1730_v39 = vmul.f32 0.5, %v1680_v53  ;;  %v4869_v49 = vld [vmem:[%s6379_s8 + $0x48] sm:$0xff]   ;;  %v4878_v54 = vld [vmem:[%s6379_s8 + $0x38] sm:$0xff]  }
 0x66c   : > { %v4877_v53 = vld [vmem:[%s6379_s8 + $0x68] sm:$0xff]   ;;  %4454 = vmatpush3.bf16.msra.mxu1 %v4878_v54 }
 0x66d   : > { %v1688_v58 = vand.u32 2147483647, %v1682_v56  ;;  %v1683_v59 = vmul.f32 0.70710677, %v1681_v57  ;;  %vm1684_vm6 = vcmp.lt.f32.partialorder %v1682_v56, 0.0  ;;  %v1731_v40 = vmul.f32 0.5, %v1681_v57  ;;  %4485 = vmatprep.subr.bf16.mxu1 %v5301_v0 }
 0x66e   : > { %v1686_v32 = vsel %vm1684_vm6, -1.0, %v5303_v44  ;;  %v4880_v56 = vld [vmem:[%s6379_s8 + $0x78] sm:$0xff]  }
 0x66f   : > { %v1690_v60 = vmul.f32 0.3275911, %v1688_v58  ;;  %v1689_v61 = vand.u32 2147483647, %v1683_v59  ;;  %v1716_v2 = vsub.f32 0.0, %v1688_v58  ;;  %vm1685_vm7 = vcmp.lt.f32.partialorder %v1683_v59, 0.0 }
 0x670   : > { %v1687_v36 = vsel %vm1685_vm7, -1.0, %v5303_v44 }
 0x671   : > { %v1692_v62 = vadd.f32 1.0, %v1690_v60  ;;  %v1691_v63 = vmul.f32 0.3275911, %v1689_v61  ;;  %v1717_v3 = vsub.f32 0.0, %v1689_v61  ;;  %v1718_v5 = vmul.f32 %v1716_v2, %v1688_v58 }
 0x673   : > { %4961 = vrcp.f32 %v1692_v62  ;;  %v1693_v1 = vadd.f32 1.0, %v1691_v63  ;;  %v1719_v9 = vmul.f32 %v1717_v3, %v1689_v61  ;;  %v1720_v10 = vmul.f32 1.442695, %v1718_v5  ;;  %v4881_v5 = vld [vmem:[%s6379_s8 + $0x80] sm:$0xff]  }
 0x675   : > { %4963 = vrcp.f32 %v1693_v1  ;;  %v1722_v15 = vmul.f32 1.442695, %v1719_v9  ;;  %v4885_v9 = vld [vmem:[%s6379_s8 + $0xa0] sm:$0xff]  }
 0x676   : > { %4965 = vpow2.f32 %v1720_v10  ;;  %v4886_v10 = vld [vmem:[%s6379_s8 + $0xa8] sm:$0xff]  }
 0x677   : > { %4967 = vpow2.f32 %v1722_v15 }
 0x67d   : > { %v4962_v4 = vpop.eup %4961 }
 0x67e   : > { %v1698_v6 = vmul.f32 1.0614054, %v4962_v4 }
 0x67f   : > { %v4964_v7 = vpop.eup %4963 }
 0x680   : > { %v1700_v8 = vadd.f32 -1.4531521, %v1698_v6  ;;  %v1699_v11 = vmul.f32 1.0614054, %v4964_v7  ;;  %v4966_v26 = vpop.eup %4965  ;;  %v4882_v6 = vld [vmem:[%s6379_s8 + $0x88] sm:$0xff]  }
 0x681   : > { %v4968_v30 = vpop.eup %4967 }
 0x682   : > { %v1702_v12 = vmul.f32 %v4962_v4, %v1700_v8  ;;  %v1701_v13 = vadd.f32 -1.4531521, %v1699_v11  ;;  %v4884_v8 = vld [vmem:[%s6379_s8 + $0x98] sm:$0xff]   ;;  %v4887_v11 = vld [vmem:[%s6379_s8 + $0xb0] sm:$0xff]  }
 0x684   : > { %v1704_v14 = vadd.f32 1.4214138, %v1702_v12  ;;  %v1703_v16 = vmul.f32 %v4964_v7, %v1701_v13  ;;  %v4888_v12 = vld [vmem:[%s6379_s8 + $0xb8] sm:$0xff]  }
 0x686   : > { %v1706_v17 = vmul.f32 %v4962_v4, %v1704_v14  ;;  %v1705_v18 = vadd.f32 1.4214138, %v1703_v16 }
 0x688   : > { %v1708_v19 = vadd.f32 -0.28449672, %v1706_v17  ;;  %v1707_v20 = vmul.f32 %v4964_v7, %v1705_v18 }
 0x68a   : > { %v1710_v21 = vmul.f32 %v4962_v4, %v1708_v19  ;;  %v1709_v22 = vadd.f32 -0.28449672, %v1707_v20 }
 0x68c   : > { %v1712_v23 = vadd.f32 0.2548296, %v1710_v21  ;;  %v1711_v24 = vmul.f32 %v4964_v7, %v1709_v22 }
 0x68e   : > { %v1714_v25 = vmul.f32 %v4962_v4, %v1712_v23  ;;  %v1713_v27 = vadd.f32 0.2548296, %v1711_v24  ;;  %v2038_v4 = vld [vmem:[#allocation8 + $0x8] sm:$0xf] }
 0x690   : > { %v1724_v28 = vmul.f32 %v4966_v26, %v1714_v25  ;;  %v1715_v29 = vmul.f32 %v4964_v7, %v1713_v27  ;;  %v4883_v7 = vld [vmem:[%s6379_s8 + $0x90] sm:$0xff]   ;;  %v4889_v27 = vld [vmem:[%s6382_s11] sm:$0xff]  }
 0x692   : > { %v1726_v31 = vsub.f32 1.0, %v1724_v28  ;;  %v1725_v33 = vmul.f32 %v4968_v30, %v1715_v29  ;;  %v4890_v28 = vld [vmem:[%s6382_s11 + $0x8] sm:$0xff]   ;;  %v4892_v29 = vld [vmem:[%s6382_s11 + $0x10] sm:$0xff]   ;;  %v4894_v30 = vld [vmem:[%s6382_s11 + $0x18] sm:$0xff]  }
 0x694   : > { %v1728_v34 = vmul.f32 %v1726_v31, %v1686_v32  ;;  %v1727_v35 = vsub.f32 1.0, %v1725_v33  ;;  %v4896_v31 = vld [vmem:[%s6382_s11 + $0x20] sm:$0xff]   ;;  %v4898_v32 = vld [vmem:[%s6382_s11 + $0x28] sm:$0xff]   ;;  %v4900_v33 = vld [vmem:[%s6382_s11 + $0x30] sm:$0xff]  }
 0x696   : > { %v1732_v37 = vadd.f32 1.0, %v1728_v34  ;;  %v1729_v38 = vmul.f32 %v1727_v35, %v1687_v36  ;;  %v3906_v35 = vld [vmem:[#allocation10] ss:$0 sm:$0xff] }
 0x698   : > { %v1733_v41 = vadd.f32 1.0, %v1729_v38  ;;  %v1734_v42 = vmul.f32 %v1732_v37, %v1730_v39 }
 0x69a   : > { %v1735_v43 = vmul.f32 %v1733_v41, %v1731_v40 }
 0x69c   : > { %v1736_v45 = vpack.c.bf16 %v1735_v43, %v1734_v42 }
 0x69e   : > { %4408 = vmatpush3.bf16.msra.mxu0 %v1736_v45 }
 0x69f   : > { %4413 = vmatprep.subr.bf16.mxu0 %v5301_v0 }
 0x6a1   : > { %4410 = vmatmul.mubr.msk.bf16.vlgmr.msra.gmra.mrb[28].mxu0 %vm1202_vm5, %v1737_v46 }
 0x6a2   : > { %4414 = vmatpush3.bf16.msra.mxu0 %v1736_v45  ;;  %4415 = vmatprep.mubr.msk.bf16.mxu0 %vm5302_vm0, %v5301_v0 }
 0x6a3   : > { %4419 = vmatprep.subr.bf16.mxu0 %v5301_v0 }
 0x6a9   : > { %4416 = vmatmul.mubr.msk.bf16.vlgmr.msra.gmra.mrb[32].mxu0 %vm1202_vm5, %v1799_v47 }
 0x6aa   : > { %4420 = vmatpush3.bf16.msra.mxu0 %v4867_v48  ;;  %4435 = vmatprep.mubr.msk.bf16.mxu0 %vm5302_vm0, %v5301_v0 }
 0x6ab   : > { %4421 = vmatprep.subr.bf16.mxu0 %v5301_v0 }
 0x6ae   : > { %4422 = vmatpush3.bf16.msra.mxu0 %v4869_v49 }
 0x6af   : > { %4423 = vmatprep.subr.bf16.mxu0 %v5301_v0 }
 0x6b2   : > { %4424 = vmatpush3.bf16.msra.mxu0 %v4871_v50 }
 0x6b3   : > { %4425 = vmatprep.subr.bf16.mxu0 %v5301_v0 }
 0x6b6   : > { %4426 = vmatpush3.bf16.msra.mxu0 %v4873_v51 }
 0x6b7   : > { %4427 = vmatprep.subr.bf16.mxu0 %v5301_v0 }
 0x6ba   : > { %4428 = vmatpush3.bf16.msra.mxu0 %v4875_v52 }
 0x6bb   : > { %4429 = vmatprep.subr.bf16.mxu0 %v5301_v0 }
 0x6be   : > { %4430 = vmatpush3.bf16.msra.mxu0 %v4877_v53 }
 0x6bf   : > { %4431 = vmatprep.subr.bf16.mxu0 %v5301_v0 }
 0x6c2   : > { %4432 = vmatpush3.bf16.msra.mxu0 %v4879_v55 }
 0x6c3   : > { %4433 = vmatprep.subr.bf16.mxu0 %v5301_v0 }
 0x6c6   : > { %4434 = vmatpush3.bf16.msra.mxu0 %v4880_v56 }
 0x6c7   : > { %4459 = vmatprep.subr.bf16.mxu0 %v5301_v0 }
 0x774   : > { %v1775_v57 = vpop.f32.mrb[28].mxu0 }
 0x775   : > { %v1781_v58 = vpack.c.bf16 %v1775_v57, %v1775_v57  ;;  %v4411_v59 = vpop.f32.mrb[29].mxu0 }
 0x776   : > { %v1778_v60 = vpop.f32.mrb[30].mxu0 }
 0x777   : > { %v4412_v61 = vpop.f32.mrb[31].mxu0  ;;  %4456 = vmatmul.mubr.bf16.vlgmr.msra.gmra.mrb[20].mxu1 %v1781_v58 }
 0x778   : > { %4487 = vmatprep.mubr.msk.bf16.mxu1 %vm5302_vm0, %v5301_v0 }
 0x77c   : > { %v1837_v62 = vpop.f32.mrb[32].mxu0 }
 0x77d   : > { %v1843_v63 = vpack.c.bf16 %v1837_v62, %v1837_v62  ;;  %v4417_v1 = vpop.f32.mrb[33].mxu0 }
 0x77e   : > { %v1840_v2 = vpop.f32.mrb[34].mxu0 }
 0x77f   : > { %v4418_v3 = vpop.f32.mrb[35].mxu0  ;;  %4436 = vmatmul.mubr.bf16.vlgmr.msra.gmra.mrb[36].mxu0 %v1843_v63 }
 0x780   : > { %4460 = vmatpush3.bf16.msra.mxu0 %v1736_v45  ;;  %4461 = vmatprep.mubr.msk.bf16.mxu0 %vm5302_vm0, %v5301_v0 }
 0x781   : > { %4465 = vmatprep.subr.bf16.mxu0 %v5301_v0 }
 0x787   : > { %4462 = vmatmul.mubr.msk.bf16.vlgmr.msra.gmra.mrb[40].mxu0 %vm1202_vm5, %v2038_v4 }
 0x788   : > { %4466 = vmatpush3.bf16.msra.mxu0 %v4881_v5  ;;  %4481 = vmatprep.mubr.msk.bf16.mxu0 %vm5302_vm0, %v5301_v0 }
 0x789   : > { %4467 = vmatprep.subr.bf16.mxu0 %v5301_v0 }
 0x78c   : > { %4468 = vmatpush3.bf16.msra.mxu0 %v4882_v6  ;;  %v2225_v6 = vld [vmem:[#allocation11] sm:$0xf] }
 0x78d   : > { %4469 = vmatprep.subr.bf16.mxu0 %v5301_v0 }
 0x790   : > { %4470 = vmatpush3.bf16.msra.mxu0 %v4883_v7  ;;  %v2292_v7 = vld [vmem:[#allocation11 + $0x4] sm:$0xf] }
 0x791   : > { %4471 = vmatprep.subr.bf16.mxu0 %v5301_v0 }
 0x794   : > { %4472 = vmatpush3.bf16.msra.mxu0 %v4884_v8  ;;  %v4891_v8 = vld [vmem:[%s6382_s11 + $0x40] sm:$0xff]  }
 0x795   : > { %4473 = vmatprep.subr.bf16.mxu0 %v5301_v0 }
 0x798   : > { %4474 = vmatpush3.bf16.msra.mxu0 %v4885_v9  ;;  %v4893_v9 = vld [vmem:[%s6382_s11 + $0x48] sm:$0xff]  }
 0x799   : > { %4475 = vmatprep.subr.bf16.mxu0 %v5301_v0 }
 0x79c   : > { %4476 = vmatpush3.bf16.msra.mxu0 %v4886_v10  ;;  %v4895_v10 = vld [vmem:[%s6382_s11 + $0x50] sm:$0xff]  }
 0x79d   : > { %4477 = vmatprep.subr.bf16.mxu0 %v5301_v0 }
 0x7a0   : > { %4478 = vmatpush3.bf16.msra.mxu0 %v4887_v11  ;;  %v4897_v11 = vld [vmem:[%s6382_s11 + $0x58] sm:$0xff]  }
 0x7a1   : > { %4479 = vmatprep.subr.bf16.mxu0 %v5301_v0 }
 0x7a4   : > { %4480 = vmatpush3.bf16.msra.mxu0 %v4888_v12  ;;  %v4899_v12 = vld [vmem:[%s6382_s11 + $0x60] sm:$0xff]  }
 0x7a5   : > { %4517 = vmatprep.subr.bf16.mxu0 %v5301_v0 }
 0x84a   : > { %v2031_v13 = vpop.f32.mrb[20].mxu1 }
 0x84b   : > { %v4457_v14 = vpop.f32.mrb[21].mxu1 }
 0x84c   : > { %v2034_v15 = vpop.f32.mrb[22].mxu1  ;;  %v4902_v14 = vld [vmem:[%s6382_s11 + $0x38] sm:$0xff]  }
 0x84d   : > { %v4458_v16 = vpop.f32.mrb[23].mxu1  ;;  %v4903_v15 = vld [vmem:[%s6382_s11 + $0x70] sm:$0xff]  }
 0x84e   : > { %v4904_v16 = vld [vmem:[%s6382_s11 + $0x78] sm:$0xff]  }
 0x852   : > { %v1943_v17 = vpop.f32.mrb[36].mxu0 }
 0x853   : > { %v2032_v18 = vadd.f32 %v2031_v13, %v1943_v17  ;;  %v4437_v19 = vpop.f32.mrb[37].mxu0  ;;  %v4901_v13 = vld [vmem:[%s6382_s11 + $0x68] sm:$0xff]  }
 0x854   : > { %v1946_v20 = vpop.f32.mrb[38].mxu0 }
 0x855   : > { %v4438_v21 = vpop.f32.mrb[39].mxu0 }
 0x85a   : > { %v2076_v22 = vpop.f32.mrb[40].mxu0 }
 0x85b   : > { %v2082_v23 = vpack.c.bf16 %v2076_v22, %v2076_v22  ;;  %v4463_v24 = vpop.f32.mrb[41].mxu0 }
 0x85c   : > { %v2079_v25 = vpop.f32.mrb[42].mxu0 }
 0x85d   : > { %v4464_v26 = vpop.f32.mrb[43].mxu0  ;;  %4482 = vmatmul.mubr.bf16.vlgmr.msra.gmra.mrb[44].mxu0 %v2082_v23 }
 0x85e   : > { %4533 = vmatprep.mubr.msk.bf16.mxu0 %vm5302_vm0, %v5301_v0  ;;  %4518 = vmatpush3.bf16.msra.mxu0 %v4889_v27  ;;  %v2531_v27 = vld [vmem:[#allocation11 + $0x8] sm:$0xf] }
 0x85f   : > { %4519 = vmatprep.subr.bf16.mxu0 %v5301_v0 }
 0x862   : > { %4520 = vmatpush3.bf16.msra.mxu0 %v4890_v28  ;;  %v4905_v28 = vld [vmem:[%s6382_s11 + $0x80] sm:$0xff]  }
 0x863   : > { %4521 = vmatprep.subr.bf16.mxu0 %v5301_v0 }
 0x866   : > { %4522 = vmatpush3.bf16.msra.mxu0 %v4892_v29  ;;  %v4906_v29 = vld [vmem:[%s6382_s11 + $0x88] sm:$0xff]  }
 0x867   : > { %4523 = vmatprep.subr.bf16.mxu0 %v5301_v0 }
 0x86a   : > { %4524 = vmatpush3.bf16.msra.mxu0 %v4894_v30  ;;  %v4907_v30 = vld [vmem:[%s6382_s11 + $0x90] sm:$0xff]  }
 0x86b   : > { %4525 = vmatprep.subr.bf16.mxu0 %v5301_v0 }
 0x86e   : > { %4526 = vmatpush3.bf16.msra.mxu0 %v4896_v31  ;;  %v4908_v31 = vld [vmem:[%s6382_s11 + $0x98] sm:$0xff]  }
 0x86f   : > { %4527 = vmatprep.subr.bf16.mxu0 %v5301_v0 }
 0x872   : > { %4528 = vmatpush3.bf16.msra.mxu0 %v4898_v32  ;;  %v4909_v32 = vld [vmem:[%s6382_s11 + $0xa0] sm:$0xff]  }
 0x873   : > { %4529 = vmatprep.subr.bf16.mxu0 %v5301_v0 }
 0x876   : > { %4530 = vmatpush3.bf16.msra.mxu0 %v4900_v33  ;;  %v4910_v33 = vld [vmem:[%s6382_s11 + $0xa8] sm:$0xff]  }
 0x877   : > { %4531 = vmatprep.subr.bf16.mxu0 %v5301_v0 }
 0x87a   : > { %4532 = vmatpush3.bf16.msra.mxu0 %v4902_v14 }
 0x87b   : > { %4563 = vmatprep.subr.bf16.mxu0 %v5301_v0 }
 0x930   : > { %v2182_v34 = vpop.f32.mrb[44].mxu0 }
 0x931   : > { %v2188_v36 = vadd.f32 %v2182_v34, %v2032_v18  ;;  %v4483_v37 = vpop.f32.mrb[45].mxu0  ;;  %v4911_v34 = vld [vmem:[%s6382_s11 + $0xb0] sm:$0xff]  }
 0x932   : > { %v2185_v38 = vpop.f32.mrb[46].mxu0 }
 0x933   : > { %v2196_v39 = vadd.f32 %v3906_v35, %v2188_v36  ;;  %v4484_v40 = vpop.f32.mrb[47].mxu0  ;;  %v4912_v35 = vld [vmem:[%s6382_s11 + $0xb8] sm:$0xff]  }
 0x935   : > { %v2197_v41 = vmul.f32 0.70710677, %v2196_v39  ;;  %v2221_v1 = vmul.f32 0.5, %v2196_v39 }
 0x937   : > { %v2200_v42 = vand.u32 2147483647, %v2197_v41  ;;  %vm2198_vm8 = vcmp.lt.f32.partialorder %v2197_v41, 0.0 }
 0x938   : > { %v2199_v62 = vsel %vm2198_vm8, -1.0, %v5303_v44 }
 0x939   : > { %v2201_v43 = vmul.f32 0.3275911, %v2200_v42  ;;  %v2214_v46 = vsub.f32 0.0, %v2200_v42 }
 0x93b   : > { %v2202_v45 = vadd.f32 1.0, %v2201_v43  ;;  %v2215_v48 = vmul.f32 %v2214_v46, %v2200_v42 }
 0x93d   : > { %4969 = vrcp.f32 %v2202_v45  ;;  %v2216_v51 = vmul.f32 1.442695, %v2215_v48 }
 0x93f   : > { %4971 = vpow2.f32 %v2216_v51  ;;  %v4913_v51 = vld [vmem:[%s6385_s14] sm:$0xff]  }
 0x947   : > { %v4970_v47 = vpop.eup %4969 }
 0x948   : > { %v2205_v49 = vmul.f32 1.0614054, %v4970_v47 }
 0x949   : > { %v4972_v59 = vpop.eup %4971 }
 0x94a   : > { %v2206_v50 = vadd.f32 -1.4531521, %v2205_v49 }
 0x94c   : > { %v2207_v52 = vmul.f32 %v4970_v47, %v2206_v50 }
 0x94e   : > { %v2208_v53 = vadd.f32 1.4214138, %v2207_v52  ;;  %v4914_v52 = vld [vmem:[%s6385_s14 + $0x8] sm:$0xff]  }
 0x950   : > { %v2209_v54 = vmul.f32 %v4970_v47, %v2208_v53  ;;  %v4916_v53 = vld [vmem:[%s6385_s14 + $0x10] sm:$0xff]  }
 0x952   : > { %v2210_v55 = vadd.f32 -0.28449672, %v2209_v54  ;;  %v4918_v54 = vld [vmem:[%s6385_s14 + $0x18] sm:$0xff]  }
 0x954   : > { %v2211_v56 = vmul.f32 %v4970_v47, %v2210_v55  ;;  %v4920_v55 = vld [vmem:[%s6385_s14 + $0x20] sm:$0xff]  }
 0x956   : > { %v2212_v57 = vadd.f32 0.2548296, %v2211_v56  ;;  %v4922_v56 = vld [vmem:[%s6385_s14 + $0x28] sm:$0xff]  }
 0x958   : > { %v2213_v58 = vmul.f32 %v4970_v47, %v2212_v57  ;;  %v4924_v57 = vld [vmem:[%s6385_s14 + $0x30] sm:$0xff]  }
 0x95a   : > { %v2218_v60 = vmul.f32 %v4972_v59, %v2213_v58  ;;  %v3966_v59 = vld [vmem:[#allocation13] ss:$0 sm:$0xff] }
 0x95c   : > { %v2219_v61 = vsub.f32 1.0, %v2218_v60 }
 0x95e   : > { %v2220_v63 = vmul.f32 %v2219_v61, %v2199_v62 }
 0x960   : > { %v2222_v2 = vadd.f32 1.0, %v2220_v63 }
 0x962   : > { %v2223_v3 = vmul.f32 %v2222_v2, %v2221_v1 }
 0x964   : > { %v2224_v4 = vpack.c.bf16 %v2223_v3, %v2223_v3 }
 0x966   : > { %v2232_v5 = vsel %vm2230_vm9, %v2224_v4, 0 }
 0x967   : > { %4486 = vmatpush3.bf16.msra.mxu1 %v2232_v5 }
 0x968   : > { %4491 = vmatprep.subr.bf16.mxu1 %v5301_v0 }
 0x96a   : > { %4488 = vmatmul.mubr.msk.bf16.vlgmr.msra.gmra.mrb[24].mxu1 %vm2226_vm10, %v2225_v6 }
 0x96b   : > { %4492 = vmatpush3.bf16.msra.mxu1 %v2232_v5  ;;  %4493 = vmatprep.mubr.msk.bf16.mxu1 %vm5302_vm0, %v5301_v0 }
 0x96c   : > { %4497 = vmatprep.subr.bf16.mxu1 %v5301_v0 }
 0x972   : > { %4494 = vmatmul.mubr.msk.bf16.vlgmr.msra.gmra.mrb[28].mxu1 %vm2226_vm10, %v2292_v7 }
 0x973   : > { %4498 = vmatpush3.bf16.msra.mxu1 %v4891_v8  ;;  %4513 = vmatprep.mubr.msk.bf16.mxu1 %vm5302_vm0, %v5301_v0 }
 0x974   : > { %4499 = vmatprep.subr.bf16.mxu1 %v5301_v0 }
 0x977   : > { %4500 = vmatpush3.bf16.msra.mxu1 %v4893_v9 }
 0x978   : > { %4501 = vmatprep.subr.bf16.mxu1 %v5301_v0 }
 0x97b   : > { %4502 = vmatpush3.bf16.msra.mxu1 %v4895_v10 }
 0x97c   : > { %4503 = vmatprep.subr.bf16.mxu1 %v5301_v0 }
 0x97f   : > { %4504 = vmatpush3.bf16.msra.mxu1 %v4897_v11 }
 0x980   : > { %4505 = vmatprep.subr.bf16.mxu1 %v5301_v0 }
 0x983   : > { %4506 = vmatpush3.bf16.msra.mxu1 %v4899_v12 }
 0x984   : > { %4507 = vmatprep.subr.bf16.mxu1 %v5301_v0 }
 0x987   : > { %4508 = vmatpush3.bf16.msra.mxu1 %v4901_v13 }
 0x988   : > { %4509 = vmatprep.subr.bf16.mxu1 %v5301_v0 }
 0x98b   : > { %4510 = vmatpush3.bf16.msra.mxu1 %v4903_v15 }
 0x98c   : > { %4511 = vmatprep.subr.bf16.mxu1 %v5301_v0 }
 0x98f   : > { %4512 = vmatpush3.bf16.msra.mxu1 %v4904_v16 }
 0x990   : > { %4537 = vmatprep.subr.bf16.mxu1 %v5301_v0 }
 0xa3d   : > { %v2268_v17 = vpop.f32.mrb[24].mxu1 }
 0xa3e   : > { %v2274_v18 = vpack.c.bf16 %v2268_v17, %v2268_v17  ;;  %v4489_v19 = vpop.f32.mrb[25].mxu1 }
 0xa3f   : > { %v2271_v20 = vpop.f32.mrb[26].mxu1 }
 0xa40   : > { %v4490_v21 = vpop.f32.mrb[27].mxu1  ;;  %4534 = vmatmul.mubr.bf16.vlgmr.msra.gmra.mrb[48].mxu0 %v2274_v18 }
 0xa41   : > { %4565 = vmatprep.mubr.msk.bf16.mxu0 %vm5302_vm0, %v5301_v0 }
 0xa45   : > { %v2330_v22 = vpop.f32.mrb[28].mxu1 }
 0xa46   : > { %v2336_v23 = vpack.c.bf16 %v2330_v22, %v2330_v22  ;;  %v4495_v24 = vpop.f32.mrb[29].mxu1 }
 0xa47   : > { %v2333_v25 = vpop.f32.mrb[30].mxu1 }
 0xa48   : > { %v4496_v26 = vpop.f32.mrb[31].mxu1  ;;  %4514 = vmatmul.mubr.bf16.vlgmr.msra.gmra.mrb[32].mxu1 %v2336_v23 }
 0xa49   : > { %4538 = vmatpush3.bf16.msra.mxu1 %v2232_v5  ;;  %4539 = vmatprep.mubr.msk.bf16.mxu1 %vm5302_vm0, %v5301_v0 }
 0xa4a   : > { %4543 = vmatprep.subr.bf16.mxu1 %v5301_v0 }
 0xa50   : > { %4540 = vmatmul.mubr.msk.bf16.vlgmr.msra.gmra.mrb[36].mxu1 %vm2226_vm10, %v2531_v27 }
 0xa51   : > { %4544 = vmatpush3.bf16.msra.mxu1 %v4905_v28  ;;  %4559 = vmatprep.mubr.msk.bf16.mxu1 %vm5302_vm0, %v5301_v0 }
 0xa52   : > { %4545 = vmatprep.subr.bf16.mxu1 %v5301_v0 }
 0xa55   : > { %4546 = vmatpush3.bf16.msra.mxu1 %v4906_v29  ;;  %v2718_v29 = vld [vmem:[#allocation14] sm:$0x3] }
 0xa56   : > { %4547 = vmatprep.subr.bf16.mxu1 %v5301_v0 }
 0xa59   : > { %4548 = vmatpush3.bf16.msra.mxu1 %v4907_v30  ;;  %v2783_v30 = vld [vmem:[#allocation14 + $0x2] sm:$0x3] }
 0xa5a   : > { %4549 = vmatprep.subr.bf16.mxu1 %v5301_v0 }
 0xa5d   : > { %4550 = vmatpush3.bf16.msra.mxu1 %v4908_v31  ;;  %v4915_v31 = vld [vmem:[%s6385_s14 + $0x40] sm:$0xff]  }
 0xa5e   : > { %4551 = vmatprep.subr.bf16.mxu1 %v5301_v0 }
 0xa61   : > { %4552 = vmatpush3.bf16.msra.mxu1 %v4909_v32  ;;  %v4917_v32 = vld [vmem:[%s6385_s14 + $0x48] sm:$0xff]  }
 0xa62   : > { %4553 = vmatprep.subr.bf16.mxu1 %v5301_v0 }
 0xa65   : > { %4554 = vmatpush3.bf16.msra.mxu1 %v4910_v33  ;;  %v4919_v33 = vld [vmem:[%s6385_s14 + $0x50] sm:$0xff]  }
 0xa66   : > { %4555 = vmatprep.subr.bf16.mxu1 %v5301_v0 }
 0xa69   : > { %4556 = vmatpush3.bf16.msra.mxu1 %v4911_v34  ;;  %v4921_v34 = vld [vmem:[%s6385_s14 + $0x58] sm:$0xff]  }
 0xa6a   : > { %4557 = vmatprep.subr.bf16.mxu1 %v5301_v0 }
 0xa6d   : > { %4558 = vmatpush3.bf16.msra.mxu1 %v4912_v35  ;;  %v4923_v35 = vld [vmem:[%s6385_s14 + $0x60] sm:$0xff]  }
 0xa6e   : > { %4595 = vmatprep.subr.bf16.mxu1 %v5301_v0 }
 0xb13   : > { %v2524_v36 = vpop.f32.mrb[48].mxu0 }
 0xb14   : > { %v4535_v37 = vpop.f32.mrb[49].mxu0 }
 0xb15   : > { %v2527_v38 = vpop.f32.mrb[50].mxu0  ;;  %v4926_v37 = vld [vmem:[%s6385_s14 + $0x38] sm:$0xff]  }
 0xb16   : > { %v4536_v39 = vpop.f32.mrb[51].mxu0  ;;  %v4927_v38 = vld [vmem:[%s6385_s14 + $0x70] sm:$0xff]  }
 0xb17   : > { %v4928_v39 = vld [vmem:[%s6385_s14 + $0x78] sm:$0xff]  }
 0xb1b   : > { %v2436_v40 = vpop.f32.mrb[32].mxu1 }
 0xb1c   : > { %v2525_v41 = vadd.f32 %v2524_v36, %v2436_v40  ;;  %v4515_v42 = vpop.f32.mrb[33].mxu1  ;;  %v4925_v36 = vld [vmem:[%s6385_s14 + $0x68] sm:$0xff]  }
 0xb1d   : > { %v2439_v43 = vpop.f32.mrb[34].mxu1 }
 0xb1e   : > { %v4516_v45 = vpop.f32.mrb[35].mxu1 }
 0xb23   : > { %v2569_v46 = vpop.f32.mrb[36].mxu1 }
 0xb24   : > { %v2575_v47 = vpack.c.bf16 %v2569_v46, %v2569_v46  ;;  %v4541_v48 = vpop.f32.mrb[37].mxu1 }
 0xb25   : > { %v2572_v49 = vpop.f32.mrb[38].mxu1 }
 0xb26   : > { %v4542_v50 = vpop.f32.mrb[39].mxu1  ;;  %4560 = vmatmul.mubr.bf16.vlgmr.msra.gmra.mrb[40].mxu1 %v2575_v47 }
 0xb27   : > { %4611 = vmatprep.mubr.msk.bf16.mxu1 %vm5302_vm0, %v5301_v0  ;;  %4596 = vmatpush3.bf16.msra.mxu1 %v4913_v51  ;;  %v3022_v51 = vld [vmem:[#allocation14 + $0x4] sm:$0x3] }
 0xb28   : > { %4597 = vmatprep.subr.bf16.mxu1 %v5301_v0 }
 0xb2b   : > { %4598 = vmatpush3.bf16.msra.mxu1 %v4914_v52  ;;  %v4929_v52 = vld [vmem:[%s6385_s14 + $0x80] sm:$0xff]  }
 0xb2c   : > { %4599 = vmatprep.subr.bf16.mxu1 %v5301_v0 }
 0xb2f   : > { %4600 = vmatpush3.bf16.msra.mxu1 %v4916_v53  ;;  %v4930_v53 = vld [vmem:[%s6385_s14 + $0x88] sm:$0xff]  }
 0xb30   : > { %4601 = vmatprep.subr.bf16.mxu1 %v5301_v0 }
 0xb33   : > { %4602 = vmatpush3.bf16.msra.mxu1 %v4918_v54  ;;  %v4931_v54 = vld [vmem:[%s6385_s14 + $0x90] sm:$0xff]  }
 0xb34   : > { %4603 = vmatprep.subr.bf16.mxu1 %v5301_v0 }
 0xb37   : > { %4604 = vmatpush3.bf16.msra.mxu1 %v4920_v55  ;;  %v4932_v55 = vld [vmem:[%s6385_s14 + $0x98] sm:$0xff]  }
 0xb38   : > { %4605 = vmatprep.subr.bf16.mxu1 %v5301_v0 }
 0xb3b   : > { %4606 = vmatpush3.bf16.msra.mxu1 %v4922_v56  ;;  %v4933_v56 = vld [vmem:[%s6385_s14 + $0xa0] sm:$0xff]  }
 0xb3c   : > { %4607 = vmatprep.subr.bf16.mxu1 %v5301_v0 }
 0xb3f   : > { %4608 = vmatpush3.bf16.msra.mxu1 %v4924_v57  ;;  %v4934_v57 = vld [vmem:[%s6385_s14 + $0xa8] sm:$0xff]  }
 0xb40   : > { %4609 = vmatprep.subr.bf16.mxu1 %v5301_v0 }
 0xb43   : > { %4610 = vmatpush3.bf16.msra.mxu1 %v4926_v37 }
 0xb44   : > { %4641 = vmatprep.subr.bf16.mxu1 %v5301_v0 }
 0xbf9   : > { %v2675_v58 = vpop.f32.mrb[40].mxu1 }
 0xbfa   : > { %v2681_v60 = vadd.f32 %v2675_v58, %v2525_v41  ;;  %v4561_v61 = vpop.f32.mrb[41].mxu1  ;;  %v4935_v58 = vld [vmem:[%s6385_s14 + $0xb0] sm:$0xff]  }
 0xbfb   : > { %v2678_v62 = vpop.f32.mrb[42].mxu1 }
 0xbfc   : > { %v2689_v63 = vadd.f32 %v3966_v59, %v2681_v60  ;;  %v4562_v1 = vpop.f32.mrb[43].mxu1  ;;  %v4936_v59 = vld [vmem:[%s6385_s14 + $0xb8] sm:$0xff]  }
 0xbfe   : > { %v2690_v2 = vmul.f32 0.70710677, %v2689_v63  ;;  %v2714_v24 = vmul.f32 0.5, %v2689_v63 }
 0xc00   : > { %v2693_v3 = vand.u32 2147483647, %v2690_v2  ;;  %vm2691_vm11 = vcmp.lt.f32.partialorder %v2690_v2, 0.0 }
 0xc01   : > { %v2692_v22 = vsel %vm2691_vm11, -1.0, %v5303_v44 }
 0xc02   : > { %v2694_v4 = vmul.f32 0.3275911, %v2693_v3  ;;  %v2707_v6 = vsub.f32 0.0, %v2693_v3 }
 0xc04   : > { %v2695_v5 = vadd.f32 1.0, %v2694_v4  ;;  %v2708_v8 = vmul.f32 %v2707_v6, %v2693_v3 }
 0xc06   : > { %4973 = vrcp.f32 %v2695_v5  ;;  %v2709_v11 = vmul.f32 1.442695, %v2708_v8 }
 0xc08   : > { %4975 = vpow2.f32 %v2709_v11  ;;  %v4937_v11 = vld [vmem:[%s6387_s16] sm:$0xff]  }
 0xc10   : > { %v4974_v7 = vpop.eup %4973 }
 0xc11   : > { %v2698_v9 = vmul.f32 1.0614054, %v4974_v7 }
 0xc12   : > { %v4976_v19 = vpop.eup %4975 }
 0xc13   : > { %v2699_v10 = vadd.f32 -1.4531521, %v2698_v9 }
 0xc15   : > { %v2700_v12 = vmul.f32 %v4974_v7, %v2699_v10 }
 0xc17   : > { %v2701_v13 = vadd.f32 1.4214138, %v2700_v12  ;;  %v4938_v12 = vld [vmem:[%s6387_s16 + $0x40] sm:$0xff]  }
 0xc19   : > { %v2702_v14 = vmul.f32 %v4974_v7, %v2701_v13  ;;  %v4939_v13 = vld [vmem:[%s6387_s16 + $0x8] sm:$0xff]  }
 0xc1b   : > { %v2703_v15 = vadd.f32 -0.28449672, %v2702_v14  ;;  %v4940_v14 = vld [vmem:[%s6387_s16 + $0x48] sm:$0xff]  }
 0xc1d   : > { %v2704_v16 = vmul.f32 %v4974_v7, %v2703_v15  ;;  %v4941_v15 = vld [vmem:[%s6387_s16 + $0x10] sm:$0xff]  }
 0xc1f   : > { %v2705_v17 = vadd.f32 0.2548296, %v2704_v16  ;;  %v4942_v16 = vld [vmem:[%s6387_s16 + $0x50] sm:$0xff]  }
 0xc21   : > { %v2706_v18 = vmul.f32 %v4974_v7, %v2705_v17  ;;  %v4943_v17 = vld [vmem:[%s6387_s16 + $0x18] sm:$0xff]  }
 0xc23   : > { %v2711_v20 = vmul.f32 %v4976_v19, %v2706_v18  ;;  %v4944_v18 = vld [vmem:[%s6387_s16 + $0x58] sm:$0xff]  }
 0xc25   : > { %v2712_v21 = vsub.f32 1.0, %v2711_v20  ;;  %v4026_v20 = vld [vmem:[%s6442_s21] ss:$0 sm:$0xff]  ;;  %s6443_s21 = sld [smem:[#allocation24_spill]] }
 0xc27   : > { %v2713_v23 = vmul.f32 %v2712_v21, %v2692_v22 }
 0xc29   : > { %v2715_v25 = vadd.f32 1.0, %v2713_v23 }
 0xc2b   : > { %v2716_v26 = vmul.f32 %v2715_v25, %v2714_v24  ;;  %s677_s23 = sand.u32 1, %s6443_s21  }
 0xc2c   : > { %s678_s28 = scalar_lea.vmem [#allocation16], %s677_s23  ;;  %s3564_s15 = scalar_lea.sflag [#allocation4], %s677_s23 }
 0xc2d   : > { %v2717_v27 = vpack.c.bf16 %v2716_v26, %v2716_v26  ;;  %s3576_s29 = sshll.u32 %s678_s28, 4  ;;  %s6331_s29 = int_to_ptr.vmem [resolvable:$true] %s3576_s29 }
 0xc2e   : > { %s5205_s30 = scalar_lea.vmem %s6331_s29, 16  ;;  %p5212_p0 = scmp.lt.s32.totalorder %s6331_s29, %s5210_s26 }
 0xc2f   : > { %v2723_v28 = vsel %vm2230_vm9, %v2717_v27, 0  ;;  %p5206_p6 = scmp.ne.s32.totalorder %s6331_s29, %s5205_s30  ;;  %p5213_p2 = scmp.lt.s32.totalorder %s5211_s4, %s5205_s30 }
 0xc30   : > { %4564 = vmatpush3.bf16.msra.mxu0 %v2723_v28 }
 0xc31   : > { %4569 = vmatprep.subr.bf16.mxu0 %v5301_v0  ;;  %p5207_p5 = pnand %p5206_p6, %p6447_p9  ;;  %p5214_p3 = por %p5213_p2, %p5212_p0 }
 0xc33   : > { %4566 = vmatmul.mubr.msk.bf16.vlgmr.msra.gmra.mrb[52].mxu0 %vm2226_vm10, %v2718_v29  ;;  %p5208_p10 = pneg %p5207_p5 }
 0xc34   : > { %4570 = vmatpush3.bf16.msra.mxu0 %v2723_v28  ;;  %4571 = vmatprep.mubr.msk.bf16.mxu0 %vm5302_vm0, %v5301_v0 }
 0xc35   : > { %4575 = vmatprep.subr.bf16.mxu0 %v5301_v0  ;;  %p5215_p4 = pnand %p5214_p3, %p5208_p10 }
 0xc3b   : > { %4572 = vmatmul.mubr.msk.bf16.vlgmr.msra.gmra.mrb[56].mxu0 %vm2226_vm10, %v2783_v30 }
 0xc3c   : > { %4576 = vmatpush3.bf16.msra.mxu0 %v4915_v31  ;;  %4591 = vmatprep.mubr.msk.bf16.mxu0 %vm5302_vm0, %v5301_v0 }
 0xc3d   : > { %4577 = vmatprep.subr.bf16.mxu0 %v5301_v0 }
 0xc40   : > { %4578 = vmatpush3.bf16.msra.mxu0 %v4917_v32 }
 0xc41   : > { %4579 = vmatprep.subr.bf16.mxu0 %v5301_v0 }
 0xc44   : > { %4580 = vmatpush3.bf16.msra.mxu0 %v4919_v33 }
 0xc45   : > { %4581 = vmatprep.subr.bf16.mxu0 %v5301_v0 }
 0xc48   : > { %4582 = vmatpush3.bf16.msra.mxu0 %v4921_v34 }
 0xc49   : > { %4583 = vmatprep.subr.bf16.mxu0 %v5301_v0 }
 0xc4c   : > { %4584 = vmatpush3.bf16.msra.mxu0 %v4923_v35 }
 0xc4d   : > { %4585 = vmatprep.subr.bf16.mxu0 %v5301_v0 }
 0xc50   : > { %4586 = vmatpush3.bf16.msra.mxu0 %v4925_v36 }
 0xc51   : > { %4587 = vmatprep.subr.bf16.mxu0 %v5301_v0 }
 0xc54   : > { %4588 = vmatpush3.bf16.msra.mxu0 %v4927_v38 }
 0xc55   : > { %4589 = vmatprep.subr.bf16.mxu0 %v5301_v0 }
 0xc58   : > { %4590 = vmatpush3.bf16.msra.mxu0 %v4928_v39 }
 0xc59   : > { %4615 = vmatprep.subr.bf16.mxu0 %v5301_v0 }
 0xd06   : > { %v2759_v40 = vpop.f32.mrb[52].mxu0 }
 0xd07   : > { %v2765_v41 = vpack.c.bf16 %v2759_v40, %v2759_v40  ;;  %v4567_v42 = vpop.f32.mrb[53].mxu0 }
 0xd08   : > { %v2762_v43 = vpop.f32.mrb[54].mxu0 }
 0xd09   : > { %v4568_v45 = vpop.f32.mrb[55].mxu0  ;;  %4612 = vmatmul.mubr.bf16.vlgmr.msra.gmra.mrb[44].mxu1 %v2765_v41 }
 0xd0a   : > { %4649 = vmatprep.mubr.msk.bf16.mxu1 %vm5302_vm0, %v5301_v0  ;;  %4642 = vmatpush3.bf16.msra.mxu1 %v4937_v11 }
 0xd0b   : > { %4643 = vmatprep.subr.bf16.mxu1 %v5301_v0 }
 0xd0e   : > { %v2821_v46 = vpop.f32.mrb[56].mxu0  ;;  %4644 = vmatpush3.bf16.msra.mxu1 %v4939_v13 }
 0xd0f   : > { %v2827_v47 = vpack.c.bf16 %v2821_v46, %v2821_v46  ;;  %v4573_v48 = vpop.f32.mrb[57].mxu0  ;;  %4645 = vmatprep.subr.bf16.mxu1 %v5301_v0 }
 0xd10   : > { %v2824_v49 = vpop.f32.mrb[58].mxu0 }
 0xd11   : > { %4592 = vmatmul.mubr.bf16.vlgmr.msra.gmra.mrb[60].mxu0 %v2827_v47  ;;  %v4574_v50 = vpop.f32.mrb[59].mxu0 }
 0xd12   : > { %4616 = vmatpush3.bf16.msra.mxu0 %v2723_v28  ;;  %4617 = vmatprep.mubr.msk.bf16.mxu0 %vm5302_vm0, %v5301_v0 }
 0xd13   : > { %4621 = vmatprep.subr.bf16.mxu0 %v5301_v0  ;;  %4646 = vmatpush3.bf16.msra.mxu1 %v4941_v15 }
 0xd14   : > { %4647 = vmatprep.subr.bf16.mxu1 %v5301_v0 }
 0xd17   : > { %4648 = vmatpush3.bf16.msra.mxu1 %v4943_v17 }
 0xd18   : > { %4653 = vmatprep.subr.bf16.mxu1 %v5301_v0 }
 0xd19   : > { %4618 = vmatmul.mubr.msk.bf16.vlgmr.msra.gmra.mrb[64].mxu0 %vm2226_vm10, %v3022_v51 }
 0xd1a   : > { %4622 = vmatpush3.bf16.msra.mxu0 %v4929_v52  ;;  %4637 = vmatprep.mubr.msk.bf16.mxu0 %vm5302_vm0, %v5301_v0  ;;  %v4945_v52 = vld [vmem:[%s6387_s16 + $0x20] sm:$0xff]  }
 0xd1b   : > { %4623 = vmatprep.subr.bf16.mxu0 %v5301_v0 }
 0xd1e   : > { %4624 = vmatpush3.bf16.msra.mxu0 %v4930_v53 }
 0xd1f   : > { %4625 = vmatprep.subr.bf16.mxu0 %v5301_v0 }
 0xd22   : > { %4626 = vmatpush3.bf16.msra.mxu0 %v4931_v54  ;;  %v4946_v54 = vld [vmem:[%s6387_s16 + $0x28] sm:$0xff]  }
 0xd23   : > { %4627 = vmatprep.subr.bf16.mxu0 %v5301_v0 }
 0xd26   : > { %4628 = vmatpush3.bf16.msra.mxu0 %v4932_v55  ;;  %v4948_v55 = vld [vmem:[%s6387_s16 + $0x38] sm:$0xff]  }
 0xd27   : > { %4629 = vmatprep.subr.bf16.mxu0 %v5301_v0 }
 0xd2a   : > { %4630 = vmatpush3.bf16.msra.mxu0 %v4933_v56  ;;  %v4949_v56 = vld [vmem:[%s6387_s16 + $0x60] sm:$0xff]  }
 0xd2b   : > { %4631 = vmatprep.subr.bf16.mxu0 %v5301_v0 }
 0xd2e   : > { %4632 = vmatpush3.bf16.msra.mxu0 %v4934_v57  ;;  %v4950_v57 = vld [vmem:[%s6387_s16 + $0x68] sm:$0xff]  }
 0xd2f   : > { %4633 = vmatprep.subr.bf16.mxu0 %v5301_v0 }
 0xd32   : > { %4634 = vmatpush3.bf16.msra.mxu0 %v4935_v58  ;;  %v4951_v58 = vld [vmem:[%s6387_s16 + $0x70] sm:$0xff]  }
 0xd33   : > { %4635 = vmatprep.subr.bf16.mxu0 %v5301_v0 }
 0xd36   : > { %4636 = vmatpush3.bf16.msra.mxu0 %v4936_v59  ;;  %v4952_v59 = vld [vmem:[%s6387_s16 + $0x78] sm:$0xff]  }
 0xd37   : > { %4665 = vmatprep.subr.bf16.mxu0 %v5301_v0 }
 0xddc   : > { %v3015_v60 = vpop.f32.mrb[44].mxu1 }
 0xddd   : > { %v4613_v61 = vpop.f32.mrb[45].mxu1 }
 0xdde   : > { %v3018_v62 = vpop.f32.mrb[46].mxu1 }
 0xddf   : > { %v4614_v63 = vpop.f32.mrb[47].mxu1 }
 0xde4   : > { %v2927_v1 = vpop.f32.mrb[60].mxu0 }
 0xde5   : > { %v3016_v2 = vadd.f32 %v3015_v60, %v2927_v1  ;;  %v4593_v3 = vpop.f32.mrb[61].mxu0 }
 0xde6   : > { %v2930_v4 = vpop.f32.mrb[62].mxu0  ;;  %v5304_v3 = vmov 1966171168  }
 0xde7   : > { %v4594_v5 = vpop.f32.mrb[63].mxu0  ;;  %v3362_v4 = vunpack.c.l.s4 %v5304_v3 }
 0xde8   : > { %v3364_v5 = vlaneseq }
 0xdec   : > { %v3060_v6 = vpop.f32.mrb[64].mxu0 }
 0xded   : > { %v3066_v7 = vpack.c.bf16 %v3060_v6, %v3060_v6  ;;  %v4619_v8 = vpop.f32.mrb[65].mxu0 }
 0xdee   : > { %v3063_v9 = vpop.f32.mrb[66].mxu0  ;;  %v3363_v8 = vunpack.c.0.s8 %v3362_v4 }
 0xdef   : > { %4638 = vmatmul.mubr.bf16.vlgmr.msra.gmra.mrb[68].mxu0 %v3066_v7  ;;  %v4620_v10 = vpop.f32.mrb[67].mxu0  ;;  %v3365_v9 = vshrl.u32 %v3364_v5, 7 }
 0xdf0   : > { %4673 = vmatprep.mubr.msk.bf16.mxu0 %vm5302_vm0, %v5301_v0  ;;  %4666 = vmatpush3.bf16.msra.mxu0 %v4938_v12 }
 0xdf1   : > { %4667 = vmatprep.subr.bf16.mxu0 %v5301_v0  ;;  %v3366_v10 = vsub.s32 %v3363_v8, %v3365_v9 }
 0xdf4   : > { %4668 = vmatpush3.bf16.msra.mxu0 %v4940_v14  ;;  %v3209_v14 = vld [vmem:[%s6444_s19] sm:$0x1] }
 0xdf5   : > { %4669 = vmatprep.subr.bf16.mxu0 %v5301_v0 }
 0xdf8   : > { %4670 = vmatpush3.bf16.msra.mxu0 %v4942_v16 }
 0xdf9   : > { %4671 = vmatprep.subr.bf16.mxu0 %v5301_v0 }
 0xdfc   : > { %4672 = vmatpush3.bf16.msra.mxu0 %v4944_v18 }
 0xec2   : > { %v3166_v19 = vpop.f32.mrb[68].mxu0 }
 0xec3   : > { %v3172_v21 = vadd.f32 %v3166_v19, %v3016_v2  ;;  %v4639_v22 = vpop.f32.mrb[69].mxu0 }
 0xec4   : > { %v3169_v23 = vpop.f32.mrb[70].mxu0 }
 0xec5   : > { %v3180_v24 = vadd.f32 %v4026_v20, %v3172_v21  ;;  %v4640_v25 = vpop.f32.mrb[71].mxu0 }
 0xec7   : > { %v3181_v26 = vmul.f32 0.70710677, %v3180_v24  ;;  %v3205_v49 = vmul.f32 0.5, %v3180_v24 }
 0xec9   : > { %v3184_v27 = vand.u32 2147483647, %v3181_v26  ;;  %vm3182_vm12 = vcmp.lt.f32.partialorder %v3181_v26, 0.0 }
 0xeca   : > { %v3183_v47 = vsel %vm3182_vm12, -1.0, %v5303_v44  ;;  %v4947_v44 = vld [vmem:[%s6387_s16 + $0x30] sm:$0xff]  }
 0xecb   : > { %v3185_v28 = vmul.f32 0.3275911, %v3184_v27  ;;  %v3198_v30 = vsub.f32 0.0, %v3184_v27 }
 0xecd   : > { %v3186_v29 = vadd.f32 1.0, %v3185_v28  ;;  %v3199_v32 = vmul.f32 %v3198_v30, %v3184_v27 }
 0xecf   : > { %4977 = vrcp.f32 %v3186_v29  ;;  %v3200_v35 = vmul.f32 1.442695, %v3199_v32 }
 0xed1   : > { %4979 = vpow2.f32 %v3200_v35 }
 0xed9   : > { %v4978_v31 = vpop.eup %4977 }
 0xeda   : > { %v3189_v33 = vmul.f32 1.0614054, %v4978_v31 }
 0xedb   : > { %v4980_v43 = vpop.eup %4979 }
 0xedc   : > { %v3190_v34 = vadd.f32 -1.4531521, %v3189_v33 }
 0xede   : > { %v3191_v36 = vmul.f32 %v4978_v31, %v3190_v34 }
 0xee0   : > { %v3192_v37 = vadd.f32 1.4214138, %v3191_v36 }
 0xee2   : > { %v3193_v38 = vmul.f32 %v4978_v31, %v3192_v37 }
 0xee4   : > { %v3194_v39 = vadd.f32 -0.28449672, %v3193_v38 }
 0xee6   : > { %v3195_v40 = vmul.f32 %v4978_v31, %v3194_v39 }
 0xee8   : > { %v3196_v41 = vadd.f32 0.2548296, %v3195_v40 }
 0xeea   : > { %v3197_v42 = vmul.f32 %v4978_v31, %v3196_v41 }
 0xeec   : > { %v3202_v45 = vmul.f32 %v4980_v43, %v3197_v42 }
 0xeee   : > { %v3203_v46 = vsub.f32 1.0, %v3202_v45 }
 0xef0   : > { %v3204_v48 = vmul.f32 %v3203_v46, %v3183_v47 }
 0xef2   : > { %v3206_v50 = vadd.f32 1.0, %v3204_v48 }
 0xef4   : > { %v3207_v51 = vmul.f32 %v3206_v50, %v3205_v49 }
 0xef6   : > { %v3208_v53 = vpack.c.bf16 %v3207_v51, %v3207_v51 }
 0xef8   : > { %4650 = vmatmul.mubr.msk.bf16.vlgmr.msra.gmra.mrb[48].mxu1 %vm3242_vm13, %v3208_v53  ;;  %4674 = vmatmul.mubr.msk.bf16.vlgmr.msra.gmra.mrb[72].mxu0 %vm3242_vm13, %v3208_v53 }
 0xef9   : > { %4654 = vmatpush3.bf16.msra.mxu1 %v4945_v52  ;;  %4661 = vmatprep.mubr.msk.bf16.mxu1 %vm5302_vm0, %v5301_v0 }
 0xefa   : > { %4655 = vmatprep.subr.bf16.mxu1 %v5301_v0 }
 0xefd   : > { %4656 = vmatpush3.bf16.msra.mxu1 %v4946_v54 }
 0xefe   : > { %4657 = vmatprep.subr.bf16.mxu1 %v5301_v0 }
 0xf01   : > { %4658 = vmatpush3.bf16.msra.mxu1 %v4947_v44 }
 0xf02   : > { %4659 = vmatprep.subr.bf16.mxu1 %v5301_v0 }
 0xf05   : > { %4660 = vmatpush3.bf16.msra.mxu1 %v4948_v55 }
 0xf06   : > { %4677 = vmatprep.subr.bf16.mxu1 %v5301_v0 }
 0xf08   : > { %4662 = vmatmul.mubr.msk.bf16.vlgmr.msra.gmra.mrb[52].mxu1 %vm3242_vm13, %v3208_v53 }
 0xf09   : > { %4678 = vmatpush3.bf16.msra.mxu1 %v4949_v56  ;;  %4685 = vmatprep.mubr.msk.bf16.mxu1 %vm5302_vm0, %v5301_v0 }
 0xf0a   : > { %4679 = vmatprep.subr.bf16.mxu1 %v5301_v0 }
 0xf0d   : > { %4680 = vmatpush3.bf16.msra.mxu1 %v4950_v57 }
 0xf0e   : > { %4681 = vmatprep.subr.bf16.mxu1 %v5301_v0 }
 0xf11   : > { %4682 = vmatpush3.bf16.msra.mxu1 %v4951_v58 }
 0xf12   : > { %4683 = vmatprep.subr.bf16.mxu1 %v5301_v0 }
 0xf15   : > { %4684 = vmatpush3.bf16.msra.mxu1 %v4952_v59 }
 0xf18   : > { %4686 = vmatmul.mubr.msk.bf16.vlgmr.msra.gmra.mrb[56].mxu1 %vm3242_vm13, %v3208_v53 }
 0xfcb   : > { %v3280_v60 = vpop.f32.mrb[48].mxu1  ;;  %v3445_v61 = vpop.f32.mrb[72].mxu0 }
 0xfcc   : > { %v4651_v62 = vpop.f32.mrb[49].mxu1  ;;  %v4675_v63 = vpop.f32.mrb[73].mxu0  ;;  %v3458_v11 = vrot.slane %v3445_v61, %v3366_v10  ;;  %v3286_v19 = vadd.f32 %v3280_v60, %v3209_v14 }
 0xfcd   : > { %v3283_v1 = vpop.f32.mrb[50].mxu1  ;;  %v3448_v2 = vpop.f32.mrb[74].mxu0 }
 0xfce   : > { %v4652_v6 = vpop.f32.mrb[51].mxu1  ;;  %v4676_v7 = vpop.f32.mrb[75].mxu0  ;;  %v3465_v16 = vrot.slane %v3458_v11, %v3366_v10 }
 0xfd0   : > { %v3466_v21 = vcombine.high %v3465_v16, %v3465_v16 }
 0xfdb   : > { %v3354_v0 = vpop.f32.mrb[52].mxu1 }
 0xfdc   : > { %v3367_v12 = vrot.slane %v3354_v0, %v3366_v10  ;;  %v4663_v13 = vpop.f32.mrb[53].mxu1 }
 0xfdd   : > { %v3357_v15 = vpop.f32.mrb[54].mxu1 }
 0xfde   : > { %v3368_v17 = vcombine.high %v3367_v12, %v3367_v12  ;;  %v4664_v18 = vpop.f32.mrb[55].mxu1 }
 0xfe0   : > { %v3375_v20 = vrot.slane %v3368_v17, %v3366_v10 }
 0xfe2   : > { %v3377_v22 = vadd.f32 %v3375_v20, %v3286_v19 }
 0xfe4   : > { %v3468_v23 = vadd.f32 %v3466_v21, %v3377_v22 }
 0xfeb   : > { %v3536_v24 = vpop.f32.mrb[56].mxu1 }
 0xfec   : > { %v3549_v25 = vrot.slane %v3536_v24, %v3366_v10  ;;  %v4687_v26 = vpop.f32.mrb[57].mxu1 }
 0xfed   : > { %v3539_v27 = vpop.f32.mrb[58].mxu1 }
 0xfee   : > { %v3550_v28 = vcombine.high %v3549_v25, %v3549_v25  ;;  %v4688_v29 = vpop.f32.mrb[59].mxu1 }
 0xff0   : > { %v3557_v30 = vrot.slane %v3550_v28, %v3366_v10 }
 0xff2   : > { %v3558_v31 = vcombine.high %v3557_v30, %v3557_v30 }
 0xff4   : > { %v3560_v32 = vadd.f32 %v3558_v31, %v3468_v23 }
 0xff6   : > { %3562 = vst.msk [vmem:[%s678_s28] sm:$0x1] %vm3561_vm14, %v3560_v32 }
 0xff7   : > { %5218 = shalt.err (!%p5215_p4)
}
 0xff8   : > { %s5219_s21 = scalar_lea.hbm %s6329_s20, 16  ;;  %s5223_s19 = scalar_lea.hbm %s6446_s25, 32 }
 0xff9   : > { %p5220_p12 = scmp.ne.s32.totalorder %s6329_s20, %s5219_s21  ;;  %p5224_p11 = scmp.lt.u32.totalorder %s6329_s20, %s6446_s25 }
 0xffa   : > { %p5225_p13 = scmp.lt.u32.totalorder %s5223_s19, %s5219_s21  ;;  %p5227_p6 = scmp.lt.u32.totalorder %s5219_s21, %s6329_s20 }
 0xffb   : > { %p5221_p7 = pnand %p5220_p12, %p6447_p9 }
 0xffc   : > { %p5226_p1 = por %p5225_p13, %p5224_p11 }
 0xffd   : > { %p5222_p8 = pneg %p5221_p7 }
 0xffe   : > { %p5228_p5 = por %p5227_p6, %p5226_p1 }
0x1000   : > { %p5229_p10 = pnand %p5228_p5, %p5222_p8 }
0x1002   : > { %5232 = shalt.err (!%p5229_p10)
}
0x1003   : > { %4721 = dma.vmem_to_hbm [thread:$0]  (%p6447_p9), %s6331_s29, 16, %s6329_s20, %s3564_s15  }
0x1004 PF: > { %s6448_s28 = sld [smem:[#allocation26_spill]]  ;;  %s6449_s17 = sld [smem:[#allocation23_spill]] }
0x1005   : > { %s6450_s2 = sld [smem:[#allocation30_spill]] }
0x100a   : > { %p4768_p0 = scmp.ge.s32.totalorder %s6448_s28, 2  ;;  %s3588_s30 = sand.u32 1, %s6449_s17  }
0x100b   : > { %p6451_p2 = scmp.ne.s32.totalorder %s6450_s2, 0  ;;  %s3589_s0 = scalar_lea.sflag [#allocation4], %s3588_s30 }
0x100d   : > { %p4749_p3 = pnand %p4768_p0, %p6451_p2 }
0x100f   : > { %5270 = dma.done.wait (!%p4749_p3), %s3589_s0, 16  }
0x1010   : > { %5272 = vsyncadd (!%p4749_p3), %s3589_s0, 4294967280  ;;  %s6452_s30 = sld [smem:[#allocation27_spill]]  ;;  %s6453_s27 = sld [smem:[#allocation24_spill]] }
0x1011   : > { %s6454_s28 = sld [smem:[#allocation25_spill]]  ;;  %s6455_s29 = sld [smem:[#allocation28_spill]] }
0x1016   : > { %p33_p4 = scmp.ge.s32.totalorder %s6452_s30, 4  }
0x1018   :  { %35 = sbr.rel (!%p33_p4) target bundleno = 17 (0x11), region = 183 }
0x101f   :  { %3593 = vsyncpa [#allocation3], 1 }
0x1020   :  { %3595 = vsyncpa [#allocation3 + $0x1], 1 }
0x1021   :  { %3596 = vsyncpa [#allocation6], 1 }
0x1022   :  { %3597 = vsyncpa [#allocation9], 1 }
0x1023   :  { %3598 = vsyncpa [#allocation12], 1 }
0x1024   :  { %3599 = vsyncpa [#allocation15], 1 }
0x1025   :  { %3600 = vsyncpa [#allocation4], 1 }
0x1026   :  { %3602 = vsyncpa [#allocation4 + $0x1], 1 }

</bundles_post_ra>
